<compile_context>
chip_gen: v7x
topology: tpu7x:2x2x1
jax: 0.10.0
libtpu: 0.0.40
codegen_flags: <defaults>
</compile_context>

<pallas_src>
import functools

import jax
import jax.numpy as jnp
from jax.experimental import pallas as pl
from jax.experimental.pallas import tpu as pltpu


# ------------------------------ small helpers --------------------------------
def _round_up(x, m):
    return ((x + m - 1) // m) * m


def _pick_row_tile(m):
    """Largest row tile that divides m and is a multiple of 8; else full m."""
    for c in (512, 256, 128, 64, 32, 16, 8):
        if m % c == 0:
            return c
    return m


def _pick_col_tile(n):
    """Lane tile for the output/weight N axis (full n when small)."""
    for c in (512, 256, 128):
        if n % c == 0:
            return c
    return n


def _vmem_capacity_bytes():
    try:
        return int(pltpu.get_tpu_info().vmem_capacity_bytes)
    except Exception:
        return 64 * 1024 * 1024  # conservative: v7x per-core VMEM


def _pick_time_chunk(S, rows, d_in, H, act_bytes, budget_bytes, max_chunk=64):
    """Largest divisor of S (<= max_chunk) whose streamed VMEM blocks fit `budget_bytes`."""
    best = 1
    for c in range(1, min(S, max_chunk) + 1):
        if S % c:
            continue
        per = c * rows * (2 * d_in * act_bytes      # x block (double buffered)
                          + 2 * H * act_bytes       # h_seq block (double buffered)
                          + 4 * H * 4)              # gates scratch (f32)
        if per <= budget_bytes:
            best = c
    return best


def _lstm_vmem_plan(S, rows, d_in, H, act_bytes):
    cap = _vmem_capacity_bytes()
    vmem_limit = int(min(0.75 * cap, 64 * 1024 * 1024))
    G = 4 * H
    resident = 2 * (d_in * G + H * G) * act_bytes   # W_ih^T, W_hh^T pipeline buffers
    resident += 2 * (G + 2 * rows * H) * 4          # bias, h0, c0 (f32)
    resident += 4 * rows * H * 4                    # h_n/c_n output blocks + h/c scratch
    budget = max(vmem_limit // 2 - resident, 256 * 1024)
    chunk = _pick_time_chunk(S, rows, d_in, H, act_bytes, budget)
    return chunk, vmem_limit


def _sigmoid(x):
    # One EUP push (tanh) instead of exp + reciprocal; mathematically exact.
    return 0.5 * jnp.tanh(0.5 * x) + 0.5


# --------------------------- FC head (matmul + bias) ---------------------------
def _matmul_bias_kernel(x_ref, w_ref, b_ref, o_ref):
    o_ref[...] = (jnp.dot(x_ref[...], w_ref[...],
                          preferred_element_type=jnp.float32)
                  + b_ref[...]).astype(o_ref.dtype)


def matmul_bias(x2d, w, b):
    """x2d: (M, K); w: (K, N); b: (1, N) f32.  Returns (M, N) f32.
    Tiled over M and N; K is left whole (head K == hidden_dim)."""
    M, K = x2d.shape
    N = w.shape[1]
    tm = _pick_row_tile(M)
    tn = _pick_col_tile(N)
    grid_spec = pltpu.PrefetchScalarGridSpec(
        num_scalar_prefetch=0,
        grid=(M // tm, N // tn),
        in_specs=[
            pl.BlockSpec((tm, K), lambda i, j: (i, 0)),
            pl.BlockSpec((K, tn), lambda i, j: (0, j)),
            pl.BlockSpec((1, tn), lambda i, j: (0, j)),
        ],
        out_specs=pl.BlockSpec((tm, tn), lambda i, j: (i, j)),
    )
    return pl.pallas_call(
        _matmul_bias_kernel,
        out_shape=jax.ShapeDtypeStruct((M, N), jnp.float32),
        grid_spec=grid_spec,
        compiler_params=pltpu.CompilerParams(
            dimension_semantics=("parallel", "parallel"),
            vmem_limit_bytes=int(min(0.75 * _vmem_capacity_bytes(), 64 * 1024 * 1024))),
    )(x2d, w, b)


# ------------------- fused LSTM layer (input proj + recurrence) -------------------
def _lstm_layer_kernel(x_ref, wih_ref, whh_ref, b_ref, h0_ref, c0_ref,
                       hseq_ref, hfin_ref, cfin_ref,
                       gp_sc, h_sc, c_sc,
                       *, hidden_dim, chunk, rows, unroll):
    ci = pl.program_id(0)

    @pl.when(ci == 0)
    def _():
        h_sc[...] = h0_ref[...].astype(jnp.float32)
        c_sc[...] = c0_ref[...].astype(jnp.float32)

    # Fused input projection for the whole chunk: ONE MXU matmul, no gates_pre HBM trip.
    gp_sc[...] = (jnp.dot(x_ref[...], wih_ref[...],
                          preferred_element_type=jnp.float32)
                  + b_ref[...])

    H = hidden_dim

    def step(t, carry):
        r0 = pl.multiple_of(t * rows, rows)          # rows is a multiple of 8 (sublane)
        gates = gp_sc[pl.ds(r0, rows), :] + jnp.dot(
            h_sc[...].astype(whh_ref.dtype), whh_ref[...],
            preferred_element_type=jnp.float32)
        i = _sigmoid(gates[:, 0 * H:1 * H])
        f = _sigmoid(gates[:, 1 * H:2 * H])
        g = jnp.tanh(gates[:, 2 * H:3 * H])
        o = _sigmoid(gates[:, 3 * H:4 * H])

        c = f * c_sc[...] + i * g
        h = o * jnp.tanh(c)

        h_sc[...] = h
        c_sc[...] = c
        hseq_ref[pl.ds(r0, rows), :] = h.astype(hseq_ref.dtype)
        return carry

    jax.lax.fori_loop(0, chunk, step, 0, unroll=unroll)

    # Final-state stores only once, on the last chunk.
    @pl.when(ci == pl.num_programs(0) - 1)
    def _():
        hfin_ref[...] = h_sc[...]
        cfin_ref[...] = c_sc[...]


def lstm_layer(x_flat, w_ih_t, w_hh_t, bias, h0, c0, *, seq_len, rows, hidden_dim,
               out_dtype):
    """x_flat: (S*rows, D_in) time-major flattened rows (rows = padded batch);
    w_ih_t: (D_in, 4H); w_hh_t: (H, 4H); bias: (1, 4H) f32; h0/c0: (rows, H) f32.
    Returns (h_seq_flat (S*rows, H) out_dtype, h_n (rows, H) f32, c_n (rows, H) f32)."""
    S, Bp, H = seq_len, rows, hidden_dim
    d_in = x_flat.shape[-1]
    G = 4 * H
    act_bytes = jnp.dtype(out_dtype).itemsize

    chunk, vmem_limit = _lstm_vmem_plan(S, Bp, d_in, H, act_bytes)
    unroll = min(chunk, 8)   # cap unroll to bound vreg pressure

    kernel = functools.partial(_lstm_layer_kernel, hidden_dim=H, chunk=chunk,
                               rows=Bp, unroll=unroll)

    grid_spec = pltpu.PrefetchScalarGridSpec(
        num_scalar_prefetch=0,
        grid=(S // chunk,),
        in_specs=[
            pl.BlockSpec((chunk * Bp, d_in), lambda c: (c, 0)),   # x rows for this chunk
            pl.BlockSpec((d_in, G), lambda c: (0, 0)),            # W_ih^T (resident)
            pl.BlockSpec((H, G), lambda c: (0, 0)),               # W_hh^T (resident)
            pl.BlockSpec((1, G), lambda c: (0, 0)),               # bias
            pl.BlockSpec((Bp, H), lambda c: (0, 0)),              # h0
            pl.BlockSpec((Bp, H), lambda c: (0, 0)),              # c0
        ],
        out_specs=[
            pl.BlockSpec((chunk * Bp, H), lambda c: (c, 0)),      # h_seq rows
            pl.BlockSpec((Bp, H), lambda c: (0, 0)),              # h_n (resident)
            pl.BlockSpec((Bp, H), lambda c: (0, 0)),              # c_n (resident)
        ],
        scratch_shapes=[
            pltpu.VMEM((chunk * Bp, G), jnp.float32),             # gates for the chunk
            pltpu.VMEM((Bp, H), jnp.float32),                     # h carry
            pltpu.VMEM((Bp, H), jnp.float32),                     # c carry
        ],
    )
    return pl.pallas_call(
        kernel,
        out_shape=(jax.ShapeDtypeStruct((S * Bp, H), out_dtype),
                   jax.ShapeDtypeStruct((Bp, H), jnp.float32),
                   jax.ShapeDtypeStruct((Bp, H), jnp.float32)),
        grid_spec=grid_spec,
        compiler_params=pltpu.CompilerParams(
            dimension_semantics=("arbitrary",),       # recurrence => sequential grid
            vmem_limit_bytes=vmem_limit),
    )(x_flat, w_ih_t, w_hh_t, bias, h0, c0)


# -------------------------------- Model wrapper -------------------------------
class LSTMModelPallas:
    def __init__(self, input_dim, hidden_dim, layer_dim, output_dim,
                 dropout_prob, key, dtype=jnp.float32):
        self.input_dim = input_dim
        self.hidden_dim = hidden_dim
        self.layer_dim = layer_dim
        self.output_dim = output_dim
        self.dropout_prob = dropout_prob   # inference semantics: unused
        self.dtype = dtype                 # weights / streamed activations dtype

        k = 1.0 / jnp.sqrt(hidden_dim)
        keys = jax.random.split(key, 4 * layer_dim + 2)
        ki = 0
        self.w_ih_t, self.w_hh_t, self.bias = [], [], []
        for layer in range(layer_dim):
            d_in = input_dim if layer == 0 else hidden_dim
            w_ih = jax.random.uniform(keys[ki], (4 * hidden_dim, d_in),
                                      minval=-k, maxval=k, dtype=jnp.float32); ki += 1
            w_hh = jax.random.uniform(keys[ki], (4 * hidden_dim, hidden_dim),
                                      minval=-k, maxval=k, dtype=jnp.float32); ki += 1
            b_ih = jax.random.uniform(keys[ki], (4 * hidden_dim,),
                                      minval=-k, maxval=k, dtype=jnp.float32); ki += 1
            b_hh = jax.random.uniform(keys[ki], (4 * hidden_dim,),
                                      minval=-k, maxval=k, dtype=jnp.float32); ki += 1
            self.w_ih_t.append(w_ih.T.astype(dtype))              # (d_in, 4H)
            self.w_hh_t.append(w_hh.T.astype(dtype))              # (H, 4H)
            self.bias.append((b_ih + b_hh)[None, :])               # (1, 4H) f32
        w_fc = jax.random.uniform(keys[ki], (output_dim, hidden_dim),
                                  minval=-k, maxval=k, dtype=jnp.float32); ki += 1
        b_fc = jax.random.uniform(keys[ki], (output_dim,),
                                  minval=-k, maxval=k, dtype=jnp.float32)
        self.w_fc_t = w_fc.T.astype(dtype)                          # (H, O)
        self.b_fc = b_fc[None, :]                                   # (1, O) f32

    def __call__(self, x, h0=None, c0=None):
        """x: (batch, seq, input_dim), batch_first like PyTorch."""
        B, S, _ = x.shape
        H = self.hidden_dim
        if h0 is None or c0 is None:
            h0 = jnp.zeros((self.layer_dim, B, H), jnp.float32)
            c0 = jnp.zeros((self.layer_dim, B, H), jnp.float32)

        # Time-major, batch padded to a sublane multiple (>= 8); pad rows are discarded.
        Bp = max(8, _round_up(B, 8))
        xt = jnp.transpose(x, (1, 0, 2)).astype(self.dtype)        # (S, B, D)
        if Bp != B:
            xt = jnp.pad(xt, ((0, 0), (0, Bp - B), (0, 0)))
            h0 = jnp.pad(h0, ((0, 0), (0, Bp - B), (0, 0)))
            c0 = jnp.pad(c0, ((0, 0), (0, Bp - B), (0, 0)))
        h0 = h0.astype(jnp.float32)
        c0 = c0.astype(jnp.float32)

        cur = xt.reshape(S * Bp, -1)                               # flattened time-major rows
        hn_list, cn_list = [], []
        hn_full = None
        for layer in range(self.layer_dim):
            cur, hn_full, cn_full = lstm_layer(
                cur, self.w_ih_t[layer], self.w_hh_t[layer], self.bias[layer],
                h0[layer], c0[layer],
                seq_len=S, rows=Bp, hidden_dim=H, out_dtype=self.dtype)
            hn_list.append(hn_full[:B])
            cn_list.append(cn_full[:B])
        hn = jnp.stack(hn_list, axis=0)                            # (layer_dim, B, H)
        cn = jnp.stack(cn_list, axis=0)

        if self.output_dim == 1:
            # out[:, -1, -1] only needs the FC of the last layer's final hidden state.
            out_last = matmul_bias(hn_full.astype(self.dtype), self.w_fc_t, self.b_fc)
            return out_last[:B, -1], hn, cn

        # output_dim > 1: FC over the whole sequence as one flattened matmul.
        out_flat = matmul_bias(cur, self.w_fc_t, self.b_fc)        # (S*Bp, O) f32
        out = out_flat.reshape(S, Bp, self.output_dim)[:, :B]
        return jnp.transpose(out, (1, 0, 2)), hn, cn


# ------------------------------ pure-JAX reference -----------------------------
def _reference_forward(model, x, h0, c0):
    B, S, _ = x.shape
    H = model.hidden_dim
    cur = jnp.transpose(x, (1, 0, 2)).astype(jnp.float32)
    hns, cns = [], []
    for layer in range(model.layer_dim):
        w_ih = model.w_ih_t[layer].astype(jnp.float32)
        w_hh = model.w_hh_t[layer].astype(jnp.float32)
        b = model.bias[layer]
        h = h0[layer]
        c = c0[layer]
        outs = []
        for t in range(S):
            gates = cur[t] @ w_ih + h @ w_hh + b
            i = jax.nn.sigmoid(gates[:, 0 * H:1 * H])
            f = jax.nn.sigmoid(gates[:, 1 * H:2 * H])
            g = jnp.tanh(gates[:, 2 * H:3 * H])
            o = jax.nn.sigmoid(gates[:, 3 * H:4 * H])
            c = f * c + i * g
            h = o * jnp.tanh(c)
            outs.append(h)
        cur = jnp.stack(outs, axis=0)
        hns.append(h)
        cns.append(c)
    out = jnp.transpose(cur @ model.w_fc_t.astype(jnp.float32) + model.b_fc, (1, 0, 2))
    if model.output_dim == 1:
        return out[:, -1, -1], jnp.stack(hns), jnp.stack(cns)
    return out, jnp.stack(hns), jnp.stack(cns)


if __name__ == "__main__":
    batch, seq, input_dim = 2, 8, 16
    hidden_dim, layer_dim = 32, 2
    dropout_prob = 0.0

    key = jax.random.PRNGKey(0)
    k1, k2, k3, kx = jax.random.split(key, 4)
    x = jax.random.normal(kx, (batch, seq, input_dim), dtype=jnp.float32)
    h0 = jnp.zeros((layer_dim, batch, hidden_dim), jnp.float32)
    c0 = jnp.zeros((layer_dim, batch, hidden_dim), jnp.float32)

    # ---- output_dim == 1, f32 (exact-parity check) ----
    model = LSTMModelPallas(input_dim, hidden_dim, layer_dim, 1, dropout_prob, k1)
    out, hn, cn = model(x)
    jax.block_until_ready((out, hn, cn))
    out_ref, hn_ref, cn_ref = _reference_forward(model, x, h0, c0)
    assert out.shape == (batch,)
    assert hn.shape == (layer_dim, batch, hidden_dim)
    assert cn.shape == (layer_dim, batch, hidden_dim)
    assert jnp.allclose(out, out_ref, atol=1e-4, rtol=1e-4)
    assert jnp.allclose(hn, hn_ref, atol=1e-4, rtol=1e-4)
    assert jnp.allclose(cn, cn_ref, atol=1e-4, rtol=1e-4)

    # ---- output_dim > 1, f32 (full-sequence FC path) ----
    model2 = LSTMModelPallas(input_dim, hidden_dim, layer_dim, 4, dropout_prob, k2)
    out2, hn2, cn2 = model2(x)
    jax.block_until_ready((out2, hn2, cn2))
    out2_ref, hn2_ref, cn2_ref = _reference_forward(model2, x, h0, c0)
    assert out2.shape == (batch, seq, 4)
    assert jnp.allclose(out2, out2_ref, atol=1e-4, rtol=1e-4)
    assert jnp.allclose(hn2, hn2_ref, atol=1e-4, rtol=1e-4)
    assert jnp.allclose(cn2, cn2_ref, atol=1e-4, rtol=1e-4)

    # ---- bf16 weights/activations (f32 gate math & accumulation), loose tolerance ----
    model3 = LSTMModelPallas(input_dim, hidden_dim, layer_dim, 1, dropout_prob, k3,
                             dtype=jnp.bfloat16)
    out3, hn3, cn3 = model3(x)
    jax.block_until_ready((out3, hn3, cn3))
    out3_ref, hn3_ref, cn3_ref = _reference_forward(model3, x, h0, c0)
    assert out3.shape == (batch,)
    assert jnp.allclose(out3, out3_ref, atol=5e-2, rtol=5e-2)
    assert jnp.allclose(hn3, hn3_ref, atol=5e-2, rtol=5e-2)
    assert jnp.allclose(cn3, cn3_ref, atol=5e-2, rtol=5e-2)

    print("KERNEL_OK")
</pallas_src>

<mosaic_0001>
module attributes {stable_mosaic.version = 11 : i64} {
  func.func @_lstm_layer_kernel(%arg0: i32, %arg1: memref<64x16xf32, #tpu.memory_space<vmem>>, %arg2: memref<16x128xf32, #tpu.memory_space<vmem>>, %arg3: memref<32x128xf32, #tpu.memory_space<vmem>>, %arg4: memref<1x128xf32, #tpu.memory_space<vmem>>, %arg5: memref<8x32xf32, #tpu.memory_space<vmem>>, %arg6: memref<8x32xf32, #tpu.memory_space<vmem>>, %arg7: memref<64x32xf32, #tpu.memory_space<vmem>>, %arg8: memref<8x32xf32, #tpu.memory_space<vmem>>, %arg9: memref<8x32xf32, #tpu.memory_space<vmem>>, %arg10: memref<64x128xf32, #tpu.memory_space<vmem>>, %arg11: memref<8x32xf32, #tpu.memory_space<vmem>>, %arg12: memref<8x32xf32, #tpu.memory_space<vmem>>) attributes {dimension_semantics = [#tpu.dimension_semantics<arbitrary>], iteration_bounds = array<i64: 1>, scalar_prefetch = 0 : i64, scratch_operands = 3 : i64, tpu.core_type = #tpu.core_type<tc>, window_params = [{transform_indices = @transform_0, window_bounds = array<i64: 64, 16>}, {pipeline_mode = #tpu.pipeline_mode<synchronous>, transform_indices = @transform_1, window_bounds = array<i64: 16, 128>}, {pipeline_mode = #tpu.pipeline_mode<synchronous>, transform_indices = @transform_2, window_bounds = array<i64: 32, 128>}, {pipeline_mode = #tpu.pipeline_mode<synchronous>, transform_indices = @transform_3, window_bounds = array<i64: 1, 128>}, {pipeline_mode = #tpu.pipeline_mode<synchronous>, transform_indices = @transform_4, window_bounds = array<i64: 8, 32>}, {pipeline_mode = #tpu.pipeline_mode<synchronous>, transform_indices = @transform_5, window_bounds = array<i64: 8, 32>}, {transform_indices = @transform_6, window_bounds = array<i64: 64, 32>}, {pipeline_mode = #tpu.pipeline_mode<synchronous>, transform_indices = @transform_7, window_bounds = array<i64: 8, 32>}, {pipeline_mode = #tpu.pipeline_mode<synchronous>, transform_indices = @transform_8, window_bounds = array<i64: 8, 32>}]} {
    %c0_i32 = arith.constant 0 : i32
    %0 = arith.cmpi eq, %arg0, %c0_i32 : i32
    %1 = arith.extui %0 : i1 to i32
    %c0_i32_0 = arith.constant 0 : i32
    %2 = arith.cmpi ne, %1, %c0_i32_0 : i32
    scf.if %2 {
      %c0_195 = arith.constant 0 : index
      %c0_196 = arith.constant 0 : index
      %365 = vector.load %arg5[%c0_195, %c0_196] : memref<8x32xf32, #tpu.memory_space<vmem>>, vector<8x32xf32>
      %c0_197 = arith.constant 0 : index
      %c0_198 = arith.constant 0 : index
      %366 = vector.load %arg11[%c0_197, %c0_198] : memref<8x32xf32, #tpu.memory_space<vmem>>, vector<8x32xf32>
      tpu.vector_store %arg11[%c0_197, %c0_198], %365 {strides = array<i32>} : memref<8x32xf32, #tpu.memory_space<vmem>>, vector<8x32xf32>,
      %c0_199 = arith.constant 0 : index
      %c0_200 = arith.constant 0 : index
      %367 = vector.load %arg6[%c0_199, %c0_200] : memref<8x32xf32, #tpu.memory_space<vmem>>, vector<8x32xf32>
      %c0_201 = arith.constant 0 : index
      %c0_202 = arith.constant 0 : index
      %368 = vector.load %arg12[%c0_201, %c0_202] : memref<8x32xf32, #tpu.memory_space<vmem>>, vector<8x32xf32>
      tpu.vector_store %arg12[%c0_201, %c0_202], %367 {strides = array<i32>} : memref<8x32xf32, #tpu.memory_space<vmem>>, vector<8x32xf32>,
    } else {
    }
    %c0 = arith.constant 0 : index
    %c0_1 = arith.constant 0 : index
    %3 = vector.load %arg1[%c0, %c0_1] : memref<64x16xf32, #tpu.memory_space<vmem>>, vector<64x16xf32>
    %c0_2 = arith.constant 0 : index
    %c0_3 = arith.constant 0 : index
    %4 = vector.load %arg2[%c0_2, %c0_3] : memref<16x128xf32, #tpu.memory_space<vmem>>, vector<16x128xf32>
    %cst = arith.constant dense<0.000000e+00> : vector<64x128xf32>
    %5 = tpu.matmul %3, %4, %cst {dimension_numbers = #tpu.dot_dimension_numbers<[1], [0], [0], [1], [0, 0, 1, 1], [], []>} : vector<64x16xf32>, vector<16x128xf32>, vector<64x128xf32> -> vector<64x128xf32>
    %c0_4 = arith.constant 0 : index
    %c0_5 = arith.constant 0 : index
    %6 = vector.load %arg4[%c0_4, %c0_5] : memref<1x128xf32, #tpu.memory_space<vmem>>, vector<1x128xf32>
    %7 = vector.broadcast %6 : vector<1x128xf32> to vector<64x128xf32>
    %8 = arith.addf %5, %7 : vector<64x128xf32>
    %c0_6 = arith.constant 0 : index
    %c0_7 = arith.constant 0 : index
    %9 = vector.load %arg10[%c0_6, %c0_7] : memref<64x128xf32, #tpu.memory_space<vmem>>, vector<64x128xf32>
    tpu.vector_store %arg10[%c0_6, %c0_7], %8 {strides = array<i32>} : memref<64x128xf32, #tpu.memory_space<vmem>>, vector<64x128xf32>,
    %c0_i32_8 = arith.constant 0 : i32
    %c8_i32 = arith.constant 8 : i32
    %10 = arith.muli %c0_i32_8, %c8_i32 : i32
    %11 = tpu.assume_multiple %10, 8 : i32
    %12 = arith.index_cast %11 : i32 to index
    %c0_9 = arith.constant 0 : index
    %13 = vector.load %arg10[%12, %c0_9] : memref<64x128xf32, #tpu.memory_space<vmem>>, vector<8x128xf32>
    %c0_10 = arith.constant 0 : index
    %c0_11 = arith.constant 0 : index
    %14 = vector.load %arg11[%c0_10, %c0_11] : memref<8x32xf32, #tpu.memory_space<vmem>>, vector<8x32xf32>
    %c0_12 = arith.constant 0 : index
    %c0_13 = arith.constant 0 : index
    %15 = vector.load %arg3[%c0_12, %c0_13] : memref<32x128xf32, #tpu.memory_space<vmem>>, vector<32x128xf32>
    %cst_14 = arith.constant dense<0.000000e+00> : vector<8x128xf32>
    %16 = tpu.matmul %14, %15, %cst_14 {dimension_numbers = #tpu.dot_dimension_numbers<[1], [0], [0], [1], [0, 0, 1, 1], [], []>} : vector<8x32xf32>, vector<32x128xf32>, vector<8x128xf32> -> vector<8x128xf32>
    %17 = arith.addf %13, %16 : vector<8x128xf32>
    %18 = vector.extract_strided_slice %17 {offsets = [0, 0], sizes = [8, 32], strides = [1, 1]} : vector<8x128xf32> to vector<8x32xf32>
    %cst_15 = arith.constant 5.000000e-01 : f32
    %19 = vector.broadcast %cst_15 : f32 to vector<8x32xf32>
    %20 = arith.mulf %19, %18 : vector<8x32xf32>
    %21 = math.tanh %20 : vector<8x32xf32>
    %cst_16 = arith.constant 5.000000e-01 : f32
    %22 = vector.broadcast %cst_16 : f32 to vector<8x32xf32>
    %23 = arith.mulf %22, %21 : vector<8x32xf32>
    %cst_17 = arith.constant 5.000000e-01 : f32
    %24 = vector.broadcast %cst_17 : f32 to vector<8x32xf32>
    %25 = arith.addf %23, %24 : vector<8x32xf32>
    %26 = vector.extract_strided_slice %17 {offsets = [0, 32], sizes = [8, 32], strides = [1, 1]} : vector<8x128xf32> to vector<8x32xf32>
    %cst_18 = arith.constant 5.000000e-01 : f32
    %27 = vector.broadcast %cst_18 : f32 to vector<8x32xf32>
    %28 = arith.mulf %27, %26 : vector<8x32xf32>
    %29 = math.tanh %28 : vector<8x32xf32>
    %cst_19 = arith.constant 5.000000e-01 : f32
    %30 = vector.broadcast %cst_19 : f32 to vector<8x32xf32>
    %31 = arith.mulf %30, %29 : vector<8x32xf32>
    %cst_20 = arith.constant 5.000000e-01 : f32
    %32 = vector.broadcast %cst_20 : f32 to vector<8x32xf32>
    %33 = arith.addf %31, %32 : vector<8x32xf32>
    %34 = vector.extract_strided_slice %17 {offsets = [0, 64], sizes = [8, 32], strides = [1, 1]} : vector<8x128xf32> to vector<8x32xf32>
    %35 = math.tanh %34 : vector<8x32xf32>
    %36 = vector.extract_strided_slice %17 {offsets = [0, 96], sizes = [8, 32], strides = [1, 1]} : vector<8x128xf32> to vector<8x32xf32>
    %cst_21 = arith.constant 5.000000e-01 : f32
    %37 = vector.broadcast %cst_21 : f32 to vector<8x32xf32>
    %38 = arith.mulf %37, %36 : vector<8x32xf32>
    %39 = math.tanh %38 : vector<8x32xf32>
    %cst_22 = arith.constant 5.000000e-01 : f32
    %40 = vector.broadcast %cst_22 : f32 to vector<8x32xf32>
    %41 = arith.mulf %40, %39 : vector<8x32xf32>
    %cst_23 = arith.constant 5.000000e-01 : f32
    %42 = vector.broadcast %cst_23 : f32 to vector<8x32xf32>
    %43 = arith.addf %41, %42 : vector<8x32xf32>
    %c0_24 = arith.constant 0 : index
    %c0_25 = arith.constant 0 : index
    %44 = vector.load %arg12[%c0_24, %c0_25] : memref<8x32xf32, #tpu.memory_space<vmem>>, vector<8x32xf32>
    %45 = arith.mulf %33, %44 : vector<8x32xf32>
    %46 = arith.mulf %25, %35 : vector<8x32xf32>
    %47 = arith.addf %45, %46 : vector<8x32xf32>
    %48 = math.tanh %47 : vector<8x32xf32>
    %49 = arith.mulf %43, %48 : vector<8x32xf32>
    %c0_26 = arith.constant 0 : index
    %c0_27 = arith.constant 0 : index
    %50 = vector.load %arg11[%c0_26, %c0_27] : memref<8x32xf32, #tpu.memory_space<vmem>>, vector<8x32xf32>
    tpu.vector_store %arg11[%c0_26, %c0_27], %49 {strides = array<i32>} : memref<8x32xf32, #tpu.memory_space<vmem>>, vector<8x32xf32>,
    %c0_28 = arith.constant 0 : index
    %c0_29 = arith.constant 0 : index
    %51 = vector.load %arg12[%c0_28, %c0_29] : memref<8x32xf32, #tpu.memory_space<vmem>>, vector<8x32xf32>
    tpu.vector_store %arg12[%c0_28, %c0_29], %47 {strides = array<i32>} : memref<8x32xf32, #tpu.memory_space<vmem>>, vector<8x32xf32>,
    %52 = arith.index_cast %11 : i32 to index
    %c0_30 = arith.constant 0 : index
    %53 = vector.load %arg7[%52, %c0_30] : memref<64x32xf32, #tpu.memory_space<vmem>>, vector<8x32xf32>
    tpu.vector_store %arg7[%52, %c0_30], %49 {strides = array<i32>} : memref<64x32xf32, #tpu.memory_space<vmem>>, vector<8x32xf32>,
    %c1_i32 = arith.constant 1 : i32
    %c8_i32_31 = arith.constant 8 : i32
    %54 = arith.muli %c1_i32, %c8_i32_31 : i32
    %55 = tpu.assume_multiple %54, 8 : i32
    %56 = arith.index_cast %55 : i32 to index
    %c0_32 = arith.constant 0 : index
    %57 = vector.load %arg10[%56, %c0_32] : memref<64x128xf32, #tpu.memory_space<vmem>>, vector<8x128xf32>
    %c0_33 = arith.constant 0 : index
    %c0_34 = arith.constant 0 : index
    %58 = vector.load %arg11[%c0_33, %c0_34] : memref<8x32xf32, #tpu.memory_space<vmem>>, vector<8x32xf32>
    %c0_35 = arith.constant 0 : index
    %c0_36 = arith.constant 0 : index
    %59 = vector.load %arg3[%c0_35, %c0_36] : memref<32x128xf32, #tpu.memory_space<vmem>>, vector<32x128xf32>
    %cst_37 = arith.constant dense<0.000000e+00> : vector<8x128xf32>
    %60 = tpu.matmul %58, %59, %cst_37 {dimension_numbers = #tpu.dot_dimension_numbers<[1], [0], [0], [1], [0, 0, 1, 1], [], []>} : vector<8x32xf32>, vector<32x128xf32>, vector<8x128xf32> -> vector<8x128xf32>
    %61 = arith.addf %57, %60 : vector<8x128xf32>
    %62 = vector.extract_strided_slice %61 {offsets = [0, 0], sizes = [8, 32], strides = [1, 1]} : vector<8x128xf32> to vector<8x32xf32>
    %cst_38 = arith.constant 5.000000e-01 : f32
    %63 = vector.broadcast %cst_38 : f32 to vector<8x32xf32>
    %64 = arith.mulf %63, %62 : vector<8x32xf32>
    %65 = math.tanh %64 : vector<8x32xf32>
    %cst_39 = arith.constant 5.000000e-01 : f32
    %66 = vector.broadcast %cst_39 : f32 to vector<8x32xf32>
    %67 = arith.mulf %66, %65 : vector<8x32xf32>
    %cst_40 = arith.constant 5.000000e-01 : f32
    %68 = vector.broadcast %cst_40 : f32 to vector<8x32xf32>
    %69 = arith.addf %67, %68 : vector<8x32xf32>
    %70 = vector.extract_strided_slice %61 {offsets = [0, 32], sizes = [8, 32], strides = [1, 1]} : vector<8x128xf32> to vector<8x32xf32>
    %cst_41 = arith.constant 5.000000e-01 : f32
    %71 = vector.broadcast %cst_41 : f32 to vector<8x32xf32>
    %72 = arith.mulf %71, %70 : vector<8x32xf32>
    %73 = math.tanh %72 : vector<8x32xf32>
    %cst_42 = arith.constant 5.000000e-01 : f32
    %74 = vector.broadcast %cst_42 : f32 to vector<8x32xf32>
    %75 = arith.mulf %74, %73 : vector<8x32xf32>
    %cst_43 = arith.constant 5.000000e-01 : f32
    %76 = vector.broadcast %cst_43 : f32 to vector<8x32xf32>
    %77 = arith.addf %75, %76 : vector<8x32xf32>
    %78 = vector.extract_strided_slice %61 {offsets = [0, 64], sizes = [8, 32], strides = [1, 1]} : vector<8x128xf32> to vector<8x32xf32>
    %79 = math.tanh %78 : vector<8x32xf32>
    %80 = vector.extract_strided_slice %61 {offsets = [0, 96], sizes = [8, 32], strides = [1, 1]} : vector<8x128xf32> to vector<8x32xf32>
    %cst_44 = arith.constant 5.000000e-01 : f32
    %81 = vector.broadcast %cst_44 : f32 to vector<8x32xf32>
    %82 = arith.mulf %81, %80 : vector<8x32xf32>
    %83 = math.tanh %82 : vector<8x32xf32>
    %cst_45 = arith.constant 5.000000e-01 : f32
    %84 = vector.broadcast %cst_45 : f32 to vector<8x32xf32>
    %85 = arith.mulf %84, %83 : vector<8x32xf32>
    %cst_46 = arith.constant 5.000000e-01 : f32
    %86 = vector.broadcast %cst_46 : f32 to vector<8x32xf32>
    %87 = arith.addf %85, %86 : vector<8x32xf32>
    %c0_47 = arith.constant 0 : index
    %c0_48 = arith.constant 0 : index
    %88 = vector.load %arg12[%c0_47, %c0_48] : memref<8x32xf32, #tpu.memory_space<vmem>>, vector<8x32xf32>
    %89 = arith.mulf %77, %88 : vector<8x32xf32>
    %90 = arith.mulf %69, %79 : vector<8x32xf32>
    %91 = arith.addf %89, %90 : vector<8x32xf32>
    %92 = math.tanh %91 : vector<8x32xf32>
    %93 = arith.mulf %87, %92 : vector<8x32xf32>
    %c0_49 = arith.constant 0 : index
    %c0_50 = arith.constant 0 : index
    %94 = vector.load %arg11[%c0_49, %c0_50] : memref<8x32xf32, #tpu.memory_space<vmem>>, vector<8x32xf32>
    tpu.vector_store %arg11[%c0_49, %c0_50], %93 {strides = array<i32>} : memref<8x32xf32, #tpu.memory_space<vmem>>, vector<8x32xf32>,
    %c0_51 = arith.constant 0 : index
    %c0_52 = arith.constant 0 : index
    %95 = vector.load %arg12[%c0_51, %c0_52] : memref<8x32xf32, #tpu.memory_space<vmem>>, vector<8x32xf32>
    tpu.vector_store %arg12[%c0_51, %c0_52], %91 {strides = array<i32>} : memref<8x32xf32, #tpu.memory_space<vmem>>, vector<8x32xf32>,
    %96 = arith.index_cast %55 : i32 to index
    %c0_53 = arith.constant 0 : index
    %97 = vector.load %arg7[%96, %c0_53] : memref<64x32xf32, #tpu.memory_space<vmem>>, vector<8x32xf32>
    tpu.vector_store %arg7[%96, %c0_53], %93 {strides = array<i32>} : memref<64x32xf32, #tpu.memory_space<vmem>>, vector<8x32xf32>,
    %c2_i32 = arith.constant 2 : i32
    %c8_i32_54 = arith.constant 8 : i32
    %98 = arith.muli %c2_i32, %c8_i32_54 : i32
    %99 = tpu.assume_multiple %98, 8 : i32
    %100 = arith.index_cast %99 : i32 to index
    %c0_55 = arith.constant 0 : index
    %101 = vector.load %arg10[%100, %c0_55] : memref<64x128xf32, #tpu.memory_space<vmem>>, vector<8x128xf32>
    %c0_56 = arith.constant 0 : index
    %c0_57 = arith.constant 0 : index
    %102 = vector.load %arg11[%c0_56, %c0_57] : memref<8x32xf32, #tpu.memory_space<vmem>>, vector<8x32xf32>
    %c0_58 = arith.constant 0 : index
    %c0_59 = arith.constant 0 : index
    %103 = vector.load %arg3[%c0_58, %c0_59] : memref<32x128xf32, #tpu.memory_space<vmem>>, vector<32x128xf32>
    %cst_60 = arith.constant dense<0.000000e+00> : vector<8x128xf32>
    %104 = tpu.matmul %102, %103, %cst_60 {dimension_numbers = #tpu.dot_dimension_numbers<[1], [0], [0], [1], [0, 0, 1, 1], [], []>} : vector<8x32xf32>, vector<32x128xf32>, vector<8x128xf32> -> vector<8x128xf32>
    %105 = arith.addf %101, %104 : vector<8x128xf32>
    %106 = vector.extract_strided_slice %105 {offsets = [0, 0], sizes = [8, 32], strides = [1, 1]} : vector<8x128xf32> to vector<8x32xf32>
    %cst_61 = arith.constant 5.000000e-01 : f32
    %107 = vector.broadcast %cst_61 : f32 to vector<8x32xf32>
    %108 = arith.mulf %107, %106 : vector<8x32xf32>
    %109 = math.tanh %108 : vector<8x32xf32>
    %cst_62 = arith.constant 5.000000e-01 : f32
    %110 = vector.broadcast %cst_62 : f32 to vector<8x32xf32>
    %111 = arith.mulf %110, %109 : vector<8x32xf32>
    %cst_63 = arith.constant 5.000000e-01 : f32
    %112 = vector.broadcast %cst_63 : f32 to vector<8x32xf32>
    %113 = arith.addf %111, %112 : vector<8x32xf32>
    %114 = vector.extract_strided_slice %105 {offsets = [0, 32], sizes = [8, 32], strides = [1, 1]} : vector<8x128xf32> to vector<8x32xf32>
    %cst_64 = arith.constant 5.000000e-01 : f32
    %115 = vector.broadcast %cst_64 : f32 to vector<8x32xf32>
    %116 = arith.mulf %115, %114 : vector<8x32xf32>
    %117 = math.tanh %116 : vector<8x32xf32>
    %cst_65 = arith.constant 5.000000e-01 : f32
    %118 = vector.broadcast %cst_65 : f32 to vector<8x32xf32>
    %119 = arith.mulf %118, %117 : vector<8x32xf32>
    %cst_66 = arith.constant 5.000000e-01 : f32
    %120 = vector.broadcast %cst_66 : f32 to vector<8x32xf32>
    %121 = arith.addf %119, %120 : vector<8x32xf32>
    %122 = vector.extract_strided_slice %105 {offsets = [0, 64], sizes = [8, 32], strides = [1, 1]} : vector<8x128xf32> to vector<8x32xf32>
    %123 = math.tanh %122 : vector<8x32xf32>
    %124 = vector.extract_strided_slice %105 {offsets = [0, 96], sizes = [8, 32], strides = [1, 1]} : vector<8x128xf32> to vector<8x32xf32>
    %cst_67 = arith.constant 5.000000e-01 : f32
    %125 = vector.broadcast %cst_67 : f32 to vector<8x32xf32>
    %126 = arith.mulf %125, %124 : vector<8x32xf32>
    %127 = math.tanh %126 : vector<8x32xf32>
    %cst_68 = arith.constant 5.000000e-01 : f32
    %128 = vector.broadcast %cst_68 : f32 to vector<8x32xf32>
    %129 = arith.mulf %128, %127 : vector<8x32xf32>
    %cst_69 = arith.constant 5.000000e-01 : f32
    %130 = vector.broadcast %cst_69 : f32 to vector<8x32xf32>
    %131 = arith.addf %129, %130 : vector<8x32xf32>
    %c0_70 = arith.constant 0 : index
    %c0_71 = arith.constant 0 : index
    %132 = vector.load %arg12[%c0_70, %c0_71] : memref<8x32xf32, #tpu.memory_space<vmem>>, vector<8x32xf32>
    %133 = arith.mulf %121, %132 : vector<8x32xf32>
    %134 = arith.mulf %113, %123 : vector<8x32xf32>
    %135 = arith.addf %133, %134 : vector<8x32xf32>
    %136 = math.tanh %135 : vector<8x32xf32>
    %137 = arith.mulf %131, %136 : vector<8x32xf32>
    %c0_72 = arith.constant 0 : index
    %c0_73 = arith.constant 0 : index
    %138 = vector.load %arg11[%c0_72, %c0_73] : memref<8x32xf32, #tpu.memory_space<vmem>>, vector<8x32xf32>
    tpu.vector_store %arg11[%c0_72, %c0_73], %137 {strides = array<i32>} : memref<8x32xf32, #tpu.memory_space<vmem>>, vector<8x32xf32>,
    %c0_74 = arith.constant 0 : index
    %c0_75 = arith.constant 0 : index
    %139 = vector.load %arg12[%c0_74, %c0_75] : memref<8x32xf32, #tpu.memory_space<vmem>>, vector<8x32xf32>
    tpu.vector_store %arg12[%c0_74, %c0_75], %135 {strides = array<i32>} : memref<8x32xf32, #tpu.memory_space<vmem>>, vector<8x32xf32>,
    %140 = arith.index_cast %99 : i32 to index
    %c0_76 = arith.constant 0 : index
    %141 = vector.load %arg7[%140, %c0_76] : memref<64x32xf32, #tpu.memory_space<vmem>>, vector<8x32xf32>
    tpu.vector_store %arg7[%140, %c0_76], %137 {strides = array<i32>} : memref<64x32xf32, #tpu.memory_space<vmem>>, vector<8x32xf32>,
    %c3_i32 = arith.constant 3 : i32
    %c8_i32_77 = arith.constant 8 : i32
    %142 = arith.muli %c3_i32, %c8_i32_77 : i32
    %143 = tpu.assume_multiple %142, 8 : i32
    %144 = arith.index_cast %143 : i32 to index
    %c0_78 = arith.constant 0 : index
    %145 = vector.load %arg10[%144, %c0_78] : memref<64x128xf32, #tpu.memory_space<vmem>>, vector<8x128xf32>
    %c0_79 = arith.constant 0 : index
    %c0_80 = arith.constant 0 : index
    %146 = vector.load %arg11[%c0_79, %c0_80] : memref<8x32xf32, #tpu.memory_space<vmem>>, vector<8x32xf32>
    %c0_81 = arith.constant 0 : index
    %c0_82 = arith.constant 0 : index
    %147 = vector.load %arg3[%c0_81, %c0_82] : memref<32x128xf32, #tpu.memory_space<vmem>>, vector<32x128xf32>
    %cst_83 = arith.constant dense<0.000000e+00> : vector<8x128xf32>
    %148 = tpu.matmul %146, %147, %cst_83 {dimension_numbers = #tpu.dot_dimension_numbers<[1], [0], [0], [1], [0, 0, 1, 1], [], []>} : vector<8x32xf32>, vector<32x128xf32>, vector<8x128xf32> -> vector<8x128xf32>
    %149 = arith.addf %145, %148 : vector<8x128xf32>
    %150 = vector.extract_strided_slice %149 {offsets = [0, 0], sizes = [8, 32], strides = [1, 1]} : vector<8x128xf32> to vector<8x32xf32>
    %cst_84 = arith.constant 5.000000e-01 : f32
    %151 = vector.broadcast %cst_84 : f32 to vector<8x32xf32>
    %152 = arith.mulf %151, %150 : vector<8x32xf32>
    %153 = math.tanh %152 : vector<8x32xf32>
    %cst_85 = arith.constant 5.000000e-01 : f32
    %154 = vector.broadcast %cst_85 : f32 to vector<8x32xf32>
    %155 = arith.mulf %154, %153 : vector<8x32xf32>
    %cst_86 = arith.constant 5.000000e-01 : f32
    %156 = vector.broadcast %cst_86 : f32 to vector<8x32xf32>
    %157 = arith.addf %155, %156 : vector<8x32xf32>
    %158 = vector.extract_strided_slice %149 {offsets = [0, 32], sizes = [8, 32], strides = [1, 1]} : vector<8x128xf32> to vector<8x32xf32>
    %cst_87 = arith.constant 5.000000e-01 : f32
    %159 = vector.broadcast %cst_87 : f32 to vector<8x32xf32>
    %160 = arith.mulf %159, %158 : vector<8x32xf32>
    %161 = math.tanh %160 : vector<8x32xf32>
    %cst_88 = arith.constant 5.000000e-01 : f32
    %162 = vector.broadcast %cst_88 : f32 to vector<8x32xf32>
    %163 = arith.mulf %162, %161 : vector<8x32xf32>
    %cst_89 = arith.constant 5.000000e-01 : f32
    %164 = vector.broadcast %cst_89 : f32 to vector<8x32xf32>
    %165 = arith.addf %163, %164 : vector<8x32xf32>
    %166 = vector.extract_strided_slice %149 {offsets = [0, 64], sizes = [8, 32], strides = [1, 1]} : vector<8x128xf32> to vector<8x32xf32>
    %167 = math.tanh %166 : vector<8x32xf32>
    %168 = vector.extract_strided_slice %149 {offsets = [0, 96], sizes = [8, 32], strides = [1, 1]} : vector<8x128xf32> to vector<8x32xf32>
    %cst_90 = arith.constant 5.000000e-01 : f32
    %169 = vector.broadcast %cst_90 : f32 to vector<8x32xf32>
    %170 = arith.mulf %169, %168 : vector<8x32xf32>
    %171 = math.tanh %170 : vector<8x32xf32>
    %cst_91 = arith.constant 5.000000e-01 : f32
    %172 = vector.broadcast %cst_91 : f32 to vector<8x32xf32>
    %173 = arith.mulf %172, %171 : vector<8x32xf32>
    %cst_92 = arith.constant 5.000000e-01 : f32
    %174 = vector.broadcast %cst_92 : f32 to vector<8x32xf32>
    %175 = arith.addf %173, %174 : vector<8x32xf32>
    %c0_93 = arith.constant 0 : index
    %c0_94 = arith.constant 0 : index
    %176 = vector.load %arg12[%c0_93, %c0_94] : memref<8x32xf32, #tpu.memory_space<vmem>>, vector<8x32xf32>
    %177 = arith.mulf %165, %176 : vector<8x32xf32>
    %178 = arith.mulf %157, %167 : vector<8x32xf32>
    %179 = arith.addf %177, %178 : vector<8x32xf32>
    %180 = math.tanh %179 : vector<8x32xf32>
    %181 = arith.mulf %175, %180 : vector<8x32xf32>
    %c0_95 = arith.constant 0 : index
    %c0_96 = arith.constant 0 : index
    %182 = vector.load %arg11[%c0_95, %c0_96] : memref<8x32xf32, #tpu.memory_space<vmem>>, vector<8x32xf32>
    tpu.vector_store %arg11[%c0_95, %c0_96], %181 {strides = array<i32>} : memref<8x32xf32, #tpu.memory_space<vmem>>, vector<8x32xf32>,
    %c0_97 = arith.constant 0 : index
    %c0_98 = arith.constant 0 : index
    %183 = vector.load %arg12[%c0_97, %c0_98] : memref<8x32xf32, #tpu.memory_space<vmem>>, vector<8x32xf32>
    tpu.vector_store %arg12[%c0_97, %c0_98], %179 {strides = array<i32>} : memref<8x32xf32, #tpu.memory_space<vmem>>, vector<8x32xf32>,
    %184 = arith.index_cast %143 : i32 to index
    %c0_99 = arith.constant 0 : index
    %185 = vector.load %arg7[%184, %c0_99] : memref<64x32xf32, #tpu.memory_space<vmem>>, vector<8x32xf32>
    tpu.vector_store %arg7[%184, %c0_99], %181 {strides = array<i32>} : memref<64x32xf32, #tpu.memory_space<vmem>>, vector<8x32xf32>,
    %c4_i32 = arith.constant 4 : i32
    %c8_i32_100 = arith.constant 8 : i32
    %186 = arith.muli %c4_i32, %c8_i32_100 : i32
    %187 = tpu.assume_multiple %186, 8 : i32
    %188 = arith.index_cast %187 : i32 to index
    %c0_101 = arith.constant 0 : index
    %189 = vector.load %arg10[%188, %c0_101] : memref<64x128xf32, #tpu.memory_space<vmem>>, vector<8x128xf32>
    %c0_102 = arith.constant 0 : index
    %c0_103 = arith.constant 0 : index
    %190 = vector.load %arg11[%c0_102, %c0_103] : memref<8x32xf32, #tpu.memory_space<vmem>>, vector<8x32xf32>
    %c0_104 = arith.constant 0 : index
    %c0_105 = arith.constant 0 : index
    %191 = vector.load %arg3[%c0_104, %c0_105] : memref<32x128xf32, #tpu.memory_space<vmem>>, vector<32x128xf32>
    %cst_106 = arith.constant dense<0.000000e+00> : vector<8x128xf32>
    %192 = tpu.matmul %190, %191, %cst_106 {dimension_numbers = #tpu.dot_dimension_numbers<[1], [0], [0], [1], [0, 0, 1, 1], [], []>} : vector<8x32xf32>, vector<32x128xf32>, vector<8x128xf32> -> vector<8x128xf32>
    %193 = arith.addf %189, %192 : vector<8x128xf32>
    %194 = vector.extract_strided_slice %193 {offsets = [0, 0], sizes = [8, 32], strides = [1, 1]} : vector<8x128xf32> to vector<8x32xf32>
    %cst_107 = arith.constant 5.000000e-01 : f32
    %195 = vector.broadcast %cst_107 : f32 to vector<8x32xf32>
    %196 = arith.mulf %195, %194 : vector<8x32xf32>
    %197 = math.tanh %196 : vector<8x32xf32>
    %cst_108 = arith.constant 5.000000e-01 : f32
    %198 = vector.broadcast %cst_108 : f32 to vector<8x32xf32>
    %199 = arith.mulf %198, %197 : vector<8x32xf32>
    %cst_109 = arith.constant 5.000000e-01 : f32
    %200 = vector.broadcast %cst_109 : f32 to vector<8x32xf32>
    %201 = arith.addf %199, %200 : vector<8x32xf32>
    %202 = vector.extract_strided_slice %193 {offsets = [0, 32], sizes = [8, 32], strides = [1, 1]} : vector<8x128xf32> to vector<8x32xf32>
    %cst_110 = arith.constant 5.000000e-01 : f32
    %203 = vector.broadcast %cst_110 : f32 to vector<8x32xf32>
    %204 = arith.mulf %203, %202 : vector<8x32xf32>
    %205 = math.tanh %204 : vector<8x32xf32>
    %cst_111 = arith.constant 5.000000e-01 : f32
    %206 = vector.broadcast %cst_111 : f32 to vector<8x32xf32>
    %207 = arith.mulf %206, %205 : vector<8x32xf32>
    %cst_112 = arith.constant 5.000000e-01 : f32
    %208 = vector.broadcast %cst_112 : f32 to vector<8x32xf32>
    %209 = arith.addf %207, %208 : vector<8x32xf32>
    %210 = vector.extract_strided_slice %193 {offsets = [0, 64], sizes = [8, 32], strides = [1, 1]} : vector<8x128xf32> to vector<8x32xf32>
    %211 = math.tanh %210 : vector<8x32xf32>
    %212 = vector.extract_strided_slice %193 {offsets = [0, 96], sizes = [8, 32], strides = [1, 1]} : vector<8x128xf32> to vector<8x32xf32>
    %cst_113 = arith.constant 5.000000e-01 : f32
    %213 = vector.broadcast %cst_113 : f32 to vector<8x32xf32>
    %214 = arith.mulf %213, %212 : vector<8x32xf32>
    %215 = math.tanh %214 : vector<8x32xf32>
    %cst_114 = arith.constant 5.000000e-01 : f32
    %216 = vector.broadcast %cst_114 : f32 to vector<8x32xf32>
    %217 = arith.mulf %216, %215 : vector<8x32xf32>
    %cst_115 = arith.constant 5.000000e-01 : f32
    %218 = vector.broadcast %cst_115 : f32 to vector<8x32xf32>
    %219 = arith.addf %217, %218 : vector<8x32xf32>
    %c0_116 = arith.constant 0 : index
    %c0_117 = arith.constant 0 : index
    %220 = vector.load %arg12[%c0_116, %c0_117] : memref<8x32xf32, #tpu.memory_space<vmem>>, vector<8x32xf32>
    %221 = arith.mulf %209, %220 : vector<8x32xf32>
    %222 = arith.mulf %201, %211 : vector<8x32xf32>
    %223 = arith.addf %221, %222 : vector<8x32xf32>
    %224 = math.tanh %223 : vector<8x32xf32>
    %225 = arith.mulf %219, %224 : vector<8x32xf32>
    %c0_118 = arith.constant 0 : index
    %c0_119 = arith.constant 0 : index
    %226 = vector.load %arg11[%c0_118, %c0_119] : memref<8x32xf32, #tpu.memory_space<vmem>>, vector<8x32xf32>
    tpu.vector_store %arg11[%c0_118, %c0_119], %225 {strides = array<i32>} : memref<8x32xf32, #tpu.memory_space<vmem>>, vector<8x32xf32>,
    %c0_120 = arith.constant 0 : index
    %c0_121 = arith.constant 0 : index
    %227 = vector.load %arg12[%c0_120, %c0_121] : memref<8x32xf32, #tpu.memory_space<vmem>>, vector<8x32xf32>
    tpu.vector_store %arg12[%c0_120, %c0_121], %223 {strides = array<i32>} : memref<8x32xf32, #tpu.memory_space<vmem>>, vector<8x32xf32>,
    %228 = arith.index_cast %187 : i32 to index
    %c0_122 = arith.constant 0 : index
    %229 = vector.load %arg7[%228, %c0_122] : memref<64x32xf32, #tpu.memory_space<vmem>>, vector<8x32xf32>
    tpu.vector_store %arg7[%228, %c0_122], %225 {strides = array<i32>} : memref<64x32xf32, #tpu.memory_space<vmem>>, vector<8x32xf32>,
    %c5_i32 = arith.constant 5 : i32
    %c8_i32_123 = arith.constant 8 : i32
    %230 = arith.muli %c5_i32, %c8_i32_123 : i32
    %231 = tpu.assume_multiple %230, 8 : i32
    %232 = arith.index_cast %231 : i32 to index
    %c0_124 = arith.constant 0 : index
    %233 = vector.load %arg10[%232, %c0_124] : memref<64x128xf32, #tpu.memory_space<vmem>>, vector<8x128xf32>
    %c0_125 = arith.constant 0 : index
    %c0_126 = arith.constant 0 : index
    %234 = vector.load %arg11[%c0_125, %c0_126] : memref<8x32xf32, #tpu.memory_space<vmem>>, vector<8x32xf32>
    %c0_127 = arith.constant 0 : index
    %c0_128 = arith.constant 0 : index
    %235 = vector.load %arg3[%c0_127, %c0_128] : memref<32x128xf32, #tpu.memory_space<vmem>>, vector<32x128xf32>
    %cst_129 = arith.constant dense<0.000000e+00> : vector<8x128xf32>
    %236 = tpu.matmul %234, %235, %cst_129 {dimension_numbers = #tpu.dot_dimension_numbers<[1], [0], [0], [1], [0, 0, 1, 1], [], []>} : vector<8x32xf32>, vector<32x128xf32>, vector<8x128xf32> -> vector<8x128xf32>
    %237 = arith.addf %233, %236 : vector<8x128xf32>
    %238 = vector.extract_strided_slice %237 {offsets = [0, 0], sizes = [8, 32], strides = [1, 1]} : vector<8x128xf32> to vector<8x32xf32>
    %cst_130 = arith.constant 5.000000e-01 : f32
    %239 = vector.broadcast %cst_130 : f32 to vector<8x32xf32>
    %240 = arith.mulf %239, %238 : vector<8x32xf32>
    %241 = math.tanh %240 : vector<8x32xf32>
    %cst_131 = arith.constant 5.000000e-01 : f32
    %242 = vector.broadcast %cst_131 : f32 to vector<8x32xf32>
    %243 = arith.mulf %242, %241 : vector<8x32xf32>
    %cst_132 = arith.constant 5.000000e-01 : f32
    %244 = vector.broadcast %cst_132 : f32 to vector<8x32xf32>
    %245 = arith.addf %243, %244 : vector<8x32xf32>
    %246 = vector.extract_strided_slice %237 {offsets = [0, 32], sizes = [8, 32], strides = [1, 1]} : vector<8x128xf32> to vector<8x32xf32>
    %cst_133 = arith.constant 5.000000e-01 : f32
    %247 = vector.broadcast %cst_133 : f32 to vector<8x32xf32>
    %248 = arith.mulf %247, %246 : vector<8x32xf32>
    %249 = math.tanh %248 : vector<8x32xf32>
    %cst_134 = arith.constant 5.000000e-01 : f32
    %250 = vector.broadcast %cst_134 : f32 to vector<8x32xf32>
    %251 = arith.mulf %250, %249 : vector<8x32xf32>
    %cst_135 = arith.constant 5.000000e-01 : f32
    %252 = vector.broadcast %cst_135 : f32 to vector<8x32xf32>
    %253 = arith.addf %251, %252 : vector<8x32xf32>
    %254 = vector.extract_strided_slice %237 {offsets = [0, 64], sizes = [8, 32], strides = [1, 1]} : vector<8x128xf32> to vector<8x32xf32>
    %255 = math.tanh %254 : vector<8x32xf32>
    %256 = vector.extract_strided_slice %237 {offsets = [0, 96], sizes = [8, 32], strides = [1, 1]} : vector<8x128xf32> to vector<8x32xf32>
    %cst_136 = arith.constant 5.000000e-01 : f32
    %257 = vector.broadcast %cst_136 : f32 to vector<8x32xf32>
    %258 = arith.mulf %257, %256 : vector<8x32xf32>
    %259 = math.tanh %258 : vector<8x32xf32>
    %cst_137 = arith.constant 5.000000e-01 : f32
    %260 = vector.broadcast %cst_137 : f32 to vector<8x32xf32>
    %261 = arith.mulf %260, %259 : vector<8x32xf32>
    %cst_138 = arith.constant 5.000000e-01 : f32
    %262 = vector.broadcast %cst_138 : f32 to vector<8x32xf32>
    %263 = arith.addf %261, %262 : vector<8x32xf32>
    %c0_139 = arith.constant 0 : index
    %c0_140 = arith.constant 0 : index
    %264 = vector.load %arg12[%c0_139, %c0_140] : memref<8x32xf32, #tpu.memory_space<vmem>>, vector<8x32xf32>
    %265 = arith.mulf %253, %264 : vector<8x32xf32>
    %266 = arith.mulf %245, %255 : vector<8x32xf32>
    %267 = arith.addf %265, %266 : vector<8x32xf32>
    %268 = math.tanh %267 : vector<8x32xf32>
    %269 = arith.mulf %263, %268 : vector<8x32xf32>
    %c0_141 = arith.constant 0 : index
    %c0_142 = arith.constant 0 : index
    %270 = vector.load %arg11[%c0_141, %c0_142] : memref<8x32xf32, #tpu.memory_space<vmem>>, vector<8x32xf32>
    tpu.vector_store %arg11[%c0_141, %c0_142], %269 {strides = array<i32>} : memref<8x32xf32, #tpu.memory_space<vmem>>, vector<8x32xf32>,
    %c0_143 = arith.constant 0 : index
    %c0_144 = arith.constant 0 : index
    %271 = vector.load %arg12[%c0_143, %c0_144] : memref<8x32xf32, #tpu.memory_space<vmem>>, vector<8x32xf32>
    tpu.vector_store %arg12[%c0_143, %c0_144], %267 {strides = array<i32>} : memref<8x32xf32, #tpu.memory_space<vmem>>, vector<8x32xf32>,
    %272 = arith.index_cast %231 : i32 to index
    %c0_145 = arith.constant 0 : index
    %273 = vector.load %arg7[%272, %c0_145] : memref<64x32xf32, #tpu.memory_space<vmem>>, vector<8x32xf32>
    tpu.vector_store %arg7[%272, %c0_145], %269 {strides = array<i32>} : memref<64x32xf32, #tpu.memory_space<vmem>>, vector<8x32xf32>,
    %c6_i32 = arith.constant 6 : i32
    %c8_i32_146 = arith.constant 8 : i32
    %274 = arith.muli %c6_i32, %c8_i32_146 : i32
    %275 = tpu.assume_multiple %274, 8 : i32
    %276 = arith.index_cast %275 : i32 to index
    %c0_147 = arith.constant 0 : index
    %277 = vector.load %arg10[%276, %c0_147] : memref<64x128xf32, #tpu.memory_space<vmem>>, vector<8x128xf32>
    %c0_148 = arith.constant 0 : index
    %c0_149 = arith.constant 0 : index
    %278 = vector.load %arg11[%c0_148, %c0_149] : memref<8x32xf32, #tpu.memory_space<vmem>>, vector<8x32xf32>
    %c0_150 = arith.constant 0 : index
    %c0_151 = arith.constant 0 : index
    %279 = vector.load %arg3[%c0_150, %c0_151] : memref<32x128xf32, #tpu.memory_space<vmem>>, vector<32x128xf32>
    %cst_152 = arith.constant dense<0.000000e+00> : vector<8x128xf32>
    %280 = tpu.matmul %278, %279, %cst_152 {dimension_numbers = #tpu.dot_dimension_numbers<[1], [0], [0], [1], [0, 0, 1, 1], [], []>} : vector<8x32xf32>, vector<32x128xf32>, vector<8x128xf32> -> vector<8x128xf32>
    %281 = arith.addf %277, %280 : vector<8x128xf32>
    %282 = vector.extract_strided_slice %281 {offsets = [0, 0], sizes = [8, 32], strides = [1, 1]} : vector<8x128xf32> to vector<8x32xf32>
    %cst_153 = arith.constant 5.000000e-01 : f32
    %283 = vector.broadcast %cst_153 : f32 to vector<8x32xf32>
    %284 = arith.mulf %283, %282 : vector<8x32xf32>
    %285 = math.tanh %284 : vector<8x32xf32>
    %cst_154 = arith.constant 5.000000e-01 : f32
    %286 = vector.broadcast %cst_154 : f32 to vector<8x32xf32>
    %287 = arith.mulf %286, %285 : vector<8x32xf32>
    %cst_155 = arith.constant 5.000000e-01 : f32
    %288 = vector.broadcast %cst_155 : f32 to vector<8x32xf32>
    %289 = arith.addf %287, %288 : vector<8x32xf32>
    %290 = vector.extract_strided_slice %281 {offsets = [0, 32], sizes = [8, 32], strides = [1, 1]} : vector<8x128xf32> to vector<8x32xf32>
    %cst_156 = arith.constant 5.000000e-01 : f32
    %291 = vector.broadcast %cst_156 : f32 to vector<8x32xf32>
    %292 = arith.mulf %291, %290 : vector<8x32xf32>
    %293 = math.tanh %292 : vector<8x32xf32>
    %cst_157 = arith.constant 5.000000e-01 : f32
    %294 = vector.broadcast %cst_157 : f32 to vector<8x32xf32>
    %295 = arith.mulf %294, %293 : vector<8x32xf32>
    %cst_158 = arith.constant 5.000000e-01 : f32
    %296 = vector.broadcast %cst_158 : f32 to vector<8x32xf32>
    %297 = arith.addf %295, %296 : vector<8x32xf32>
    %298 = vector.extract_strided_slice %281 {offsets = [0, 64], sizes = [8, 32], strides = [1, 1]} : vector<8x128xf32> to vector<8x32xf32>
    %299 = math.tanh %298 : vector<8x32xf32>
    %300 = vector.extract_strided_slice %281 {offsets = [0, 96], sizes = [8, 32], strides = [1, 1]} : vector<8x128xf32> to vector<8x32xf32>
    %cst_159 = arith.constant 5.000000e-01 : f32
    %301 = vector.broadcast %cst_159 : f32 to vector<8x32xf32>
    %302 = arith.mulf %301, %300 : vector<8x32xf32>
    %303 = math.tanh %302 : vector<8x32xf32>
    %cst_160 = arith.constant 5.000000e-01 : f32
    %304 = vector.broadcast %cst_160 : f32 to vector<8x32xf32>
    %305 = arith.mulf %304, %303 : vector<8x32xf32>
    %cst_161 = arith.constant 5.000000e-01 : f32
    %306 = vector.broadcast %cst_161 : f32 to vector<8x32xf32>
    %307 = arith.addf %305, %306 : vector<8x32xf32>
    %c0_162 = arith.constant 0 : index
    %c0_163 = arith.constant 0 : index
    %308 = vector.load %arg12[%c0_162, %c0_163] : memref<8x32xf32, #tpu.memory_space<vmem>>, vector<8x32xf32>
    %309 = arith.mulf %297, %308 : vector<8x32xf32>
    %310 = arith.mulf %289, %299 : vector<8x32xf32>
    %311 = arith.addf %309, %310 : vector<8x32xf32>
    %312 = math.tanh %311 : vector<8x32xf32>
    %313 = arith.mulf %307, %312 : vector<8x32xf32>
    %c0_164 = arith.constant 0 : index
    %c0_165 = arith.constant 0 : index
    %314 = vector.load %arg11[%c0_164, %c0_165] : memref<8x32xf32, #tpu.memory_space<vmem>>, vector<8x32xf32>
    tpu.vector_store %arg11[%c0_164, %c0_165], %313 {strides = array<i32>} : memref<8x32xf32, #tpu.memory_space<vmem>>, vector<8x32xf32>,
    %c0_166 = arith.constant 0 : index
    %c0_167 = arith.constant 0 : index
    %315 = vector.load %arg12[%c0_166, %c0_167] : memref<8x32xf32, #tpu.memory_space<vmem>>, vector<8x32xf32>
    tpu.vector_store %arg12[%c0_166, %c0_167], %311 {strides = array<i32>} : memref<8x32xf32, #tpu.memory_space<vmem>>, vector<8x32xf32>,
    %316 = arith.index_cast %275 : i32 to index
    %c0_168 = arith.constant 0 : index
    %317 = vector.load %arg7[%316, %c0_168] : memref<64x32xf32, #tpu.memory_space<vmem>>, vector<8x32xf32>
    tpu.vector_store %arg7[%316, %c0_168], %313 {strides = array<i32>} : memref<64x32xf32, #tpu.memory_space<vmem>>, vector<8x32xf32>,
    %c7_i32 = arith.constant 7 : i32
    %c8_i32_169 = arith.constant 8 : i32
    %318 = arith.muli %c7_i32, %c8_i32_169 : i32
    %319 = tpu.assume_multiple %318, 8 : i32
    %320 = arith.index_cast %319 : i32 to index
    %c0_170 = arith.constant 0 : index
    %321 = vector.load %arg10[%320, %c0_170] : memref<64x128xf32, #tpu.memory_space<vmem>>, vector<8x128xf32>
    %c0_171 = arith.constant 0 : index
    %c0_172 = arith.constant 0 : index
    %322 = vector.load %arg11[%c0_171, %c0_172] : memref<8x32xf32, #tpu.memory_space<vmem>>, vector<8x32xf32>
    %c0_173 = arith.constant 0 : index
    %c0_174 = arith.constant 0 : index
    %323 = vector.load %arg3[%c0_173, %c0_174] : memref<32x128xf32, #tpu.memory_space<vmem>>, vector<32x128xf32>
    %cst_175 = arith.constant dense<0.000000e+00> : vector<8x128xf32>
    %324 = tpu.matmul %322, %323, %cst_175 {dimension_numbers = #tpu.dot_dimension_numbers<[1], [0], [0], [1], [0, 0, 1, 1], [], []>} : vector<8x32xf32>, vector<32x128xf32>, vector<8x128xf32> -> vector<8x128xf32>
    %325 = arith.addf %321, %324 : vector<8x128xf32>
    %326 = vector.extract_strided_slice %325 {offsets = [0, 0], sizes = [8, 32], strides = [1, 1]} : vector<8x128xf32> to vector<8x32xf32>
    %cst_176 = arith.constant 5.000000e-01 : f32
    %327 = vector.broadcast %cst_176 : f32 to vector<8x32xf32>
    %328 = arith.mulf %327, %326 : vector<8x32xf32>
    %329 = math.tanh %328 : vector<8x32xf32>
    %cst_177 = arith.constant 5.000000e-01 : f32
    %330 = vector.broadcast %cst_177 : f32 to vector<8x32xf32>
    %331 = arith.mulf %330, %329 : vector<8x32xf32>
    %cst_178 = arith.constant 5.000000e-01 : f32
    %332 = vector.broadcast %cst_178 : f32 to vector<8x32xf32>
    %333 = arith.addf %331, %332 : vector<8x32xf32>
    %334 = vector.extract_strided_slice %325 {offsets = [0, 32], sizes = [8, 32], strides = [1, 1]} : vector<8x128xf32> to vector<8x32xf32>
    %cst_179 = arith.constant 5.000000e-01 : f32
    %335 = vector.broadcast %cst_179 : f32 to vector<8x32xf32>
    %336 = arith.mulf %335, %334 : vector<8x32xf32>
    %337 = math.tanh %336 : vector<8x32xf32>
    %cst_180 = arith.constant 5.000000e-01 : f32
    %338 = vector.broadcast %cst_180 : f32 to vector<8x32xf32>
    %339 = arith.mulf %338, %337 : vector<8x32xf32>
    %cst_181 = arith.constant 5.000000e-01 : f32
    %340 = vector.broadcast %cst_181 : f32 to vector<8x32xf32>
    %341 = arith.addf %339, %340 : vector<8x32xf32>
    %342 = vector.extract_strided_slice %325 {offsets = [0, 64], sizes = [8, 32], strides = [1, 1]} : vector<8x128xf32> to vector<8x32xf32>
    %343 = math.tanh %342 : vector<8x32xf32>
    %344 = vector.extract_strided_slice %325 {offsets = [0, 96], sizes = [8, 32], strides = [1, 1]} : vector<8x128xf32> to vector<8x32xf32>
    %cst_182 = arith.constant 5.000000e-01 : f32
    %345 = vector.broadcast %cst_182 : f32 to vector<8x32xf32>
    %346 = arith.mulf %345, %344 : vector<8x32xf32>
    %347 = math.tanh %346 : vector<8x32xf32>
    %cst_183 = arith.constant 5.000000e-01 : f32
    %348 = vector.broadcast %cst_183 : f32 to vector<8x32xf32>
    %349 = arith.mulf %348, %347 : vector<8x32xf32>
    %cst_184 = arith.constant 5.000000e-01 : f32
    %350 = vector.broadcast %cst_184 : f32 to vector<8x32xf32>
    %351 = arith.addf %349, %350 : vector<8x32xf32>
    %c0_185 = arith.constant 0 : index
    %c0_186 = arith.constant 0 : index
    %352 = vector.load %arg12[%c0_185, %c0_186] : memref<8x32xf32, #tpu.memory_space<vmem>>, vector<8x32xf32>
    %353 = arith.mulf %341, %352 : vector<8x32xf32>
    %354 = arith.mulf %333, %343 : vector<8x32xf32>
    %355 = arith.addf %353, %354 : vector<8x32xf32>
    %356 = math.tanh %355 : vector<8x32xf32>
    %357 = arith.mulf %351, %356 : vector<8x32xf32>
    %c0_187 = arith.constant 0 : index
    %c0_188 = arith.constant 0 : index
    %358 = vector.load %arg11[%c0_187, %c0_188] : memref<8x32xf32, #tpu.memory_space<vmem>>, vector<8x32xf32>
    tpu.vector_store %arg11[%c0_187, %c0_188], %357 {strides = array<i32>} : memref<8x32xf32, #tpu.memory_space<vmem>>, vector<8x32xf32>,
    %c0_189 = arith.constant 0 : index
    %c0_190 = arith.constant 0 : index
    %359 = vector.load %arg12[%c0_189, %c0_190] : memref<8x32xf32, #tpu.memory_space<vmem>>, vector<8x32xf32>
    tpu.vector_store %arg12[%c0_189, %c0_190], %355 {strides = array<i32>} : memref<8x32xf32, #tpu.memory_space<vmem>>, vector<8x32xf32>,
    %360 = arith.index_cast %319 : i32 to index
    %c0_191 = arith.constant 0 : index
    %361 = vector.load %arg7[%360, %c0_191] : memref<64x32xf32, #tpu.memory_space<vmem>>, vector<8x32xf32>
    tpu.vector_store %arg7[%360, %c0_191], %357 {strides = array<i32>} : memref<64x32xf32, #tpu.memory_space<vmem>>, vector<8x32xf32>,
    %c8_i32_192 = arith.constant 8 : i32
    %c0_i32_193 = arith.constant 0 : i32
    %362 = arith.cmpi eq, %arg0, %c0_i32_193 : i32
    %363 = arith.extui %362 : i1 to i32
    %c0_i32_194 = arith.constant 0 : i32
    %364 = arith.cmpi ne, %363, %c0_i32_194 : i32
    scf.if %364 {
      %c0_195 = arith.constant 0 : index
      %c0_196 = arith.constant 0 : index
      %365 = vector.load %arg11[%c0_195, %c0_196] : memref<8x32xf32, #tpu.memory_space<vmem>>, vector<8x32xf32>
      %c0_197 = arith.constant 0 : index
      %c0_198 = arith.constant 0 : index
      %366 = vector.load %arg8[%c0_197, %c0_198] : memref<8x32xf32, #tpu.memory_space<vmem>>, vector<8x32xf32>
      tpu.vector_store %arg8[%c0_197, %c0_198], %365 {strides = array<i32>} : memref<8x32xf32, #tpu.memory_space<vmem>>, vector<8x32xf32>,
      %c0_199 = arith.constant 0 : index
      %c0_200 = arith.constant 0 : index
      %367 = vector.load %arg12[%c0_199, %c0_200] : memref<8x32xf32, #tpu.memory_space<vmem>>, vector<8x32xf32>
      %c0_201 = arith.constant 0 : index
      %c0_202 = arith.constant 0 : index
      %368 = vector.load %arg9[%c0_201, %c0_202] : memref<8x32xf32, #tpu.memory_space<vmem>>, vector<8x32xf32>
      tpu.vector_store %arg9[%c0_201, %c0_202], %367 {strides = array<i32>} : memref<8x32xf32, #tpu.memory_space<vmem>>, vector<8x32xf32>,
    } else {
    }
    return
  }
  func.func @transform_0(%arg0: i32) -> (i32, i32) {
    %c0_i32 = arith.constant 0 : i32
    %c0_i32_0 = arith.constant 0 : i32
    return %arg0, %c0_i32 : i32, i32
  }
  func.func @transform_1(%arg0: i32) -> (i32, i32) {
    %c0_i32 = arith.constant 0 : i32
    %c0_i32_0 = arith.constant 0 : i32
    %c0_i32_1 = arith.constant 0 : i32
    return %c0_i32, %c0_i32_0 : i32, i32
  }
  func.func @transform_2(%arg0: i32) -> (i32, i32) {
    %c0_i32 = arith.constant 0 : i32
    %c0_i32_0 = arith.constant 0 : i32
    %c0_i32_1 = arith.constant 0 : i32
    return %c0_i32, %c0_i32_0 : i32, i32
  }
  func.func @transform_3(%arg0: i32) -> (i32, i32) {
    %c0_i32 = arith.constant 0 : i32
    %c0_i32_0 = arith.constant 0 : i32
    %c0_i32_1 = arith.constant 0 : i32
    return %c0_i32, %c0_i32_0 : i32, i32
  }
  func.func @transform_4(%arg0: i32) -> (i32, i32) {
    %c0_i32 = arith.constant 0 : i32
    %c0_i32_0 = arith.constant 0 : i32
    %c0_i32_1 = arith.constant 0 : i32
    return %c0_i32, %c0_i32_0 : i32, i32
  }
  func.func @transform_5(%arg0: i32) -> (i32, i32) {
    %c0_i32 = arith.constant 0 : i32
    %c0_i32_0 = arith.constant 0 : i32
    %c0_i32_1 = arith.constant 0 : i32
    return %c0_i32, %c0_i32_0 : i32, i32
  }
  func.func @transform_6(%arg0: i32) -> (i32, i32) {
    %c0_i32 = arith.constant 0 : i32
    %c0_i32_0 = arith.constant 0 : i32
    return %arg0, %c0_i32 : i32, i32
  }
  func.func @transform_7(%arg0: i32) -> (i32, i32) {
    %c0_i32 = arith.constant 0 : i32
    %c0_i32_0 = arith.constant 0 : i32
    %c0_i32_1 = arith.constant 0 : i32
    return %c0_i32, %c0_i32_0 : i32, i32
  }
  func.func @transform_8(%arg0: i32) -> (i32, i32) {
    %c0_i32 = arith.constant 0 : i32
    %c0_i32_0 = arith.constant 0 : i32
    %c0_i32_1 = arith.constant 0 : i32
    return %c0_i32, %c0_i32_0 : i32, i32
  }
}

</mosaic_0001>

<bundles_post_ra>
// kernel: tpu_custom_call.1
= control target key start
LH: loop header
LB: loop body
LE: loop exit
PB: predicated region body
PF: predicated region fallthrough
CT: control target
= control target key end

     0   :  { %14 = vsyncpa [#allocation6], 0  ;;  %vm54_vm0 = vcmask 130048   ;;  %v1524_v3 = vmov 0.0|0.0   ;;  %vm33_vm1 = vcmask 261120   ;;  %vm1525_vm2 = vmmov 0   ;;  %s1842_s0 = inlined_call_operand.vmem [shape: f32[64,16], index: 0, kind: input, shape index: {}]   ;;  %s1843_s1 = inlined_call_operand.vmem [shape: f32[16,128], index: 1, kind: input, shape index: {}]   ;;  %s1844_s2 = inlined_call_operand.vmem [shape: f32[32,128], index: 2, kind: input, shape index: {}]   ;;  %s1845_s3 = inlined_call_operand.vmem [shape: f32[1,128], index: 3, kind: input, shape index: {}]   ;;  %s1846_s4 = inlined_call_operand.vmem [shape: f32[8,32], index: 4, kind: input, shape index: {}]   ;;  %s1847_s5 = inlined_call_operand.vmem [shape: f32[8,32], index: 5, kind: input, shape index: {}]   ;;  %s1848_s6 = inlined_call_operand.vmem [shape: f32[64,32], index: 6, kind: output, shape index: {0}]   ;;  %s1849_s7 = inlined_call_operand.hbm [shape: f32[8,32], index: 7, kind: output, shape index: {1}]   ;;  %s1850_s8 = inlined_call_operand.hbm [shape: f32[8,32], index: 8, kind: output, shape index: {2}]  }
   0x1   :  { %v45_v0 = vld [vmem:[%s1843_s1] sm:$0xff]  ;;  %v46_v1 = vld [vmem:[%s1843_s1 + $0x8] sm:$0xff]  ;;  %1372 = vmatprep.subr.bf16.mxu1 %v1524_v3  ;;  %v196_v8 = vld [vmem:[%s1844_s2 + $0x10] sm:$0xff]  ;;  %v1526_v10 = vmov 0.0  }
   0x2   :  { %v194_v2 = vld [vmem:[%s1844_s2] sm:$0xff]  ;;  %v1368_v4 = vpack.c.bf16 %v46_v1, %v45_v0  ;;  %v195_v5 = vld [vmem:[%s1844_s2 + $0x8] sm:$0xff]  ;;  %v197_v9 = vld [vmem:[%s1844_s2 + $0x18] sm:$0xff]  ;;  %1288 = vmatprep.mubr.msk.f32.mxu1 %vm1525_vm2, %v1526_v10 }
   0x3   :  { %v37_v6 = vld [vmem:[%s1842_s0] sm:$0xff]  ;;  %v1593_v7 = vpack.c.bf16 %v195_v5, %v194_v2 }
   0x4   :  { %1268 = vmatprep.mubr.msk.f32.mxu0 %vm54_vm0, %v37_v6  ;;  %v32_v11 = vld [vmem:[%s1846_s4] sm:$0xff]  ;;  %1369 = vmatprep.subr.bf16.mxu0 %v1368_v4 }
   0x5   :  { %34 = vst.msk [vmem:[#allocation3] sm:$0xff] %vm33_vm1, %v32_v11 }
   0x6   :  { %15 = vsyncpa [#allocation8], 0  ;;  %1374 = vmatpush3.bf16.msra.mxu1 %v1593_v7  ;;  %1371 = vmatpush3.bf16.msra.mxu0 %v1368_v4  ;;  %v38_v12 = vld [vmem:[%s1842_s0 + $0x8] sm:$0xff]  ;;  %v1612_v13 = vpack.c.bf16 %v197_v9, %v196_v8  ;;  %v35_v15 = vld [vmem:[%s1847_s5] sm:$0xff]  ;;  %s1527_s24 = smov 64   ;;  %s1528_s5 = smov 32  }
   0x7   :  { %1375 = vmatprep.subr.bf16.mxu1 %v1524_v3  ;;  %1384 = vmatprep.subr.bf16.mxu0 %v1524_v3  ;;  %36 = vst.msk [vmem:[#allocation4] sm:$0xff] %vm33_vm1, %v35_v15  ;;  %v1637_v16 = vld [vmem:[%s1845_s3] ss:$0 sm:$0xff]  ;;  %s1529_s3 = smov 96   ;;  %v39_v58 = vld [vmem:[%s1842_s0 + $0x10] sm:$0xff]  ;;  %v40_v59 = vld [vmem:[%s1842_s0 + $0x18] sm:$0xff] }
   0x8   :  { %v41_v60 = vld [vmem:[%s1842_s0 + $0x20] sm:$0xff]  ;;  %v42_v61 = vld [vmem:[%s1842_s0 + $0x28] sm:$0xff]  ;;  %v43_v62 = vld [vmem:[%s1842_s0 + $0x30] sm:$0xff]  ;;  %s1530_s26 = smov [#allocation7]  }
   0x9   :  { %1269 = vmatmul.mubr.msk.f32.vlgmr.msra.gmra.mrb[0].mxu0 %vm54_vm0, %v38_v12  ;;  %v44_v63 = vld [vmem:[%s1842_s0 + $0x38] sm:$0xff]  ;;  %s1176_s27 = sshll.u32 %s1530_s26, 4  ;;  %s1177_s27 = int_to_ptr.vmem [resolvable:$true] %s1176_s27 }
   0xa   :  { %1377 = vmatpush3.bf16.msra.mxu1 %v1612_v13  ;;  %1386 = vmatpush3.bf16.msra.mxu0 %v1593_v7  ;;  %s1476_s28 = scalar_lea.vmem %s1177_s27, 128  ;;  %p1481_p1 = scmp.lt.s32.totalorder %s1177_s27, %s1177_s27 }
   0xb   :  { %1378 = vmatprep.subr.bf16.mxu1 %v1524_v3  ;;  %1387 = vmatprep.subr.bf16.mxu0 %v1524_v3  ;;  %p1477_p0 = scmp.ne.s32.totalorder %s1177_s27, %s1476_s28  ;;  %p1482_p2 = scmp.lt.s32.totalorder %s1476_s28, %s1476_s28 }
   0xc   :  { %v193_v14 = vld [vmem:[#allocation3] sm:$0xff]  ;;  %1271 = vmatprep.mubr.msk.f32.mxu0 %vm54_vm0, %v39_v58 }
   0xd   :  { %1289 = vmatmul.mubr.msk.f32.vlgmr.msra.gmra.mrb[0].mxu1 %vm33_vm1, %v193_v14  ;;  %1272 = vmatmul.mubr.msk.f32.gmra.mrb[2].mxu0 %vm54_vm0, %v40_v59  ;;  %p1483_p3 = por %p1482_p2, %p1481_p1 }
   0xe   :  { %1380 = vmatpush3.bf16.msra.mxu1 %v1593_v7  ;;  %1299 = vmatprep.mubr.msk.f32.mxu1 %vm1525_vm2, %v1526_v10  ;;  %v278_v24 = vld [vmem:[#allocation4] sm:$0xff] }
   0xf   :  { %1381 = vmatprep.subr.bf16.mxu1 %v1524_v3  ;;  %1389 = vmatpush3.bf16.msra.mxu0 %v1612_v13  ;;  %p1484_p4 = pnand %p1483_p3, %p1477_p0 }
  0x10   :  { %1396 = vmatprep.subr.bf16.mxu0 %v1524_v3  ;;  %1274 = vmatprep.mubr.msk.f32.mxu0 %vm54_vm0, %v41_v60 }
  0x11   :  { %1275 = vmatmul.mubr.msk.f32.gmra.mrb[4].mxu0 %vm54_vm0, %v42_v61 }
  0x12   :  { %1383 = vmatpush3.bf16.msra.mxu1 %v1612_v13  ;;  %1277 = vmatprep.mubr.msk.f32.mxu0 %vm54_vm0, %v43_v62 }
  0x13   :  { %1390 = vmatprep.subr.bf16.mxu1 %v1524_v3 }
  0x15   :  { %1278 = vmatmul.mubr.msk.f32.gmra.mrb[6].mxu0 %vm54_vm0, %v44_v63 }
  0x16   :  { %1310 = vmatprep.mubr.msk.f32.mxu0 %vm1525_vm2, %v1526_v10 }
  0xdc   :  { %v1270_v17 = vpop.f32.mrb[0].mxu0 }
  0xdd   :  { %v145_v18 = vpop.f32.mrb[1].mxu0  ;;  %v151_v42 = vadd.f32 %v1270_v17, %v1637_v16 }
  0xde   :  { %v146_v19 = vadd.f32 %v1637_v16, %v145_v18 }
  0xe0   :  { %v268_v20 = vpop.f32.mrb[0].mxu1  ;;  %v1273_v5 = vpop.f32.mrb[2].mxu0 }
  0xe1   :  { %v272_v21 = vadd.f32 %v268_v20, %v146_v19  ;;  %v1290_v22 = vpop.f32.mrb[1].mxu1  ;;  %v155_v6 = vpop.f32.mrb[3].mxu0 }
  0xe2   :  { %v156_v17 = vadd.f32 %v1637_v16, %v155_v6 }
  0xe3   :  { %1428 = vtanh.f32 %v272_v21  ;;  %v273_v25 = vmul.f32 0.5, %v272_v21 }
  0xe4   :  { %v1694_v8 = vpop.f32.mrb[4].mxu0 }
  0xe5   :  { %1430 = vtanh.f32 %v273_v25  ;;  %v1696_v9 = vpop.f32.mrb[5].mxu0 }
  0xe6   :  { %v166_v61 = vadd.f32 %v1637_v16, %v1696_v9 }
  0xe8   :  { %v1710_v14 = vpop.f32.mrb[6].mxu0 }
  0xe9   :  { %v1712_v15 = vpop.f32.mrb[7].mxu0 }
  0xed   :  { %v1429_v23 = vpop.eup %1428 }
  0xee   :  { %285 = vrot.lane.b32.xlu0 %v1429_v23, %s1527_s24 }
  0xef   :  { %v1431_v26 = vpop.eup %1430 }
  0xf0   :  { %v275_v27 = vmul.f32 0.5, %v1431_v26 }
  0xf2   :  { %280 = vrot.lane.b32.xlu0 %v278_v24, %s1528_s5  ;;  %v276_v28 = vadd.f32 0.5, %v275_v27 }
 0x160   :  { %v286_v29 = vpop.permute.xlu0 %285 }
 0x161   :  { %v288_v30 = vmul.f32 %v286_v29, %v276_v28 }
 0x163   :  { %290 = vrot.lane.b32.xlu1 %v288_v30, %s1528_s5 }
 0x164   :  { %v281_v31 = vpop.permute.xlu0 %280 }
 0x165   :  { %v283_v32 = vmul.f32 %v281_v31, %v276_v28 }
 0x1d5   :  { %v291_v33 = vpop.permute.xlu1 %290 }
 0x1d6   :  { %v293_v34 = vadd.f32 %v291_v33, %v283_v32 }
 0x1d8   :  { %1432 = vtanh.f32 %v293_v34 }
 0x1e2   :  { %v1433_v35 = vpop.eup %1432 }
 0x1e3   :  { %296 = vrot.lane.b32.xlu1 %v1433_v35, %s1527_s24 }
 0x1e7   :  { %306 = vrot.lane.b32.xlu1 %v293_v34, %s1529_s3 }
 0x255   :  { %v297_v36 = vpop.permute.xlu1 %296 }
 0x256   :  { %v299_v37 = vmul.f32 %v297_v36, %v276_v28 }
 0x258   :  { %301 = vrot.lane.b32.xlu0 %v299_v37, %s1528_s5 }
 0x259   :  { %v307_v38 = vpop.permute.xlu1 %306 }
 0x25a   :  { %309 = vst.msk [vmem:[#allocation4] sm:$0xff] %vm33_vm1, %v307_v38 }
 0x261   :  { %v397_v39 = vld [vmem:[#allocation4] sm:$0xff] }
 0x262   :  { %399 = vrot.lane.b32.xlu1 %v397_v39, %s1528_s5  ;;  %v161_v39 = vadd.f32 %v1273_v5, %v1637_v16 }
 0x2ca   :  { %v302_v40 = vpop.permute.xlu0 %301 }
 0x2cb   :  { %304 = vst.msk [vmem:[#allocation3] sm:$0xff] %vm33_vm1, %v302_v40  ;;  %310 = vst.msk [vmem:[%s1848_s6] sm:$0xff] %vm33_vm1, %v302_v40 }
 0x2d2   :  { %v313_v41 = vld [vmem:[#allocation3] sm:$0xff] }
 0x2d3   :  { %1300 = vmatmul.mubr.msk.f32.vlgmr.msra.gmra.mrb[2].mxu1 %vm33_vm1, %v313_v41 }
 0x2d4   :  { %1392 = vmatpush3.bf16.msra.mxu1 %v1593_v7  ;;  %1321 = vmatprep.mubr.msk.f32.mxu1 %vm1525_vm2, %v1526_v10  ;;  %v400_v53 = vpop.permute.xlu1 %399 }
 0x2d5   :  { %1393 = vmatprep.subr.bf16.mxu1 %v1524_v3 }
 0x2d8   :  { %1395 = vmatpush3.bf16.msra.mxu1 %v1612_v13 }
 0x2d9   :  { %1402 = vmatprep.subr.bf16.mxu1 %v1524_v3 }
 0x3a6   :  { %v387_v43 = vpop.f32.mrb[2].mxu1 }
 0x3a7   :  { %v391_v44 = vadd.f32 %v387_v43, %v151_v42  ;;  %v1301_v45 = vpop.f32.mrb[3].mxu1 }
 0x3a9   :  { %1434 = vtanh.f32 %v391_v44  ;;  %v392_v47 = vmul.f32 0.5, %v391_v44 }
 0x3ab   :  { %1436 = vtanh.f32 %v392_v47 }
 0x3b3   :  { %v1435_v46 = vpop.eup %1434 }
 0x3b4   :  { %404 = vrot.lane.b32.xlu0 %v1435_v46, %s1527_s24 }
 0x3b5   :  { %v1437_v48 = vpop.eup %1436 }
 0x3b6   :  { %v394_v49 = vmul.f32 0.5, %v1437_v48 }
 0x3b8   :  { %v395_v50 = vadd.f32 0.5, %v394_v49 }
 0x3ba   :  { %v402_v54 = vmul.f32 %v400_v53, %v395_v50 }
 0x426   :  { %v405_v51 = vpop.permute.xlu0 %404 }
 0x427   :  { %v407_v52 = vmul.f32 %v405_v51, %v395_v50 }
 0x429   :  { %409 = vrot.lane.b32.xlu0 %v407_v52, %s1528_s5 }
 0x49b   :  { %v410_v55 = vpop.permute.xlu0 %409 }
 0x49c   :  { %v412_v56 = vadd.f32 %v410_v55, %v402_v54 }
 0x49e   :  { %1438 = vtanh.f32 %v412_v56 }
 0x4a8   :  { %v1439_v57 = vpop.eup %1438 }
 0x4a9   :  { %415 = vrot.lane.b32.xlu1 %v1439_v57, %s1527_s24 }
 0x4ad   :  { %425 = vrot.lane.b32.xlu1 %v412_v56, %s1529_s3 }
 0x51b   :  { %v416_v0 = vpop.permute.xlu1 %415 }
 0x51c   :  { %v418_v1 = vmul.f32 %v416_v0, %v395_v50 }
 0x51e   :  { %420 = vrot.lane.b32.xlu0 %v418_v1, %s1528_s5 }
 0x51f   :  { %v426_v2 = vpop.permute.xlu1 %425 }
 0x520   :  { %428 = vst.msk [vmem:[#allocation4] sm:$0xff] %vm33_vm1, %v426_v2 }
 0x527   :  { %v517_v4 = vld [vmem:[#allocation4] sm:$0xff] }
 0x528   :  { %519 = vrot.lane.b32.xlu1 %v517_v4, %s1528_s5 }
 0x590   :  { %v421_v11 = vpop.permute.xlu0 %420 }
 0x591   :  { %423 = vst.msk [vmem:[#allocation3] sm:$0xff] %vm33_vm1, %v421_v11  ;;  %1201 = vst.msk [vmem:[%s1848_s6 + $0x8] sm:$0xff] %vm33_vm1, %v421_v11 }
 0x598   :  { %v433_v12 = vld [vmem:[#allocation3] sm:$0xff] }
 0x599   :  { %1311 = vmatmul.mubr.msk.f32.vlgmr.msra.gmra.mrb[8].mxu0 %vm33_vm1, %v433_v12 }
 0x59a   :  { %1398 = vmatpush3.bf16.msra.mxu0 %v1593_v7  ;;  %1332 = vmatprep.mubr.msk.f32.mxu0 %vm1525_vm2, %v1526_v10  ;;  %v520_v28 = vpop.permute.xlu1 %519 }
 0x59b   :  { %1399 = vmatprep.subr.bf16.mxu0 %v1524_v3 }
 0x59e   :  { %1401 = vmatpush3.bf16.msra.mxu0 %v1612_v13 }
 0x59f   :  { %1408 = vmatprep.subr.bf16.mxu0 %v1524_v3 }
 0x66c   :  { %v507_v18 = vpop.f32.mrb[8].mxu0 }
 0x66d   :  { %v511_v19 = vadd.f32 %v507_v18, %v156_v17  ;;  %v1312_v20 = vpop.f32.mrb[9].mxu0 }
 0x66f   :  { %1440 = vtanh.f32 %v511_v19  ;;  %v512_v22 = vmul.f32 0.5, %v511_v19 }
 0x671   :  { %1442 = vtanh.f32 %v512_v22 }
 0x679   :  { %v1441_v21 = vpop.eup %1440 }
 0x67a   :  { %524 = vrot.lane.b32.xlu0 %v1441_v21, %s1527_s24 }
 0x67b   :  { %v1443_v23 = vpop.eup %1442 }
 0x67c   :  { %v514_v24 = vmul.f32 0.5, %v1443_v23 }
 0x67e   :  { %v515_v25 = vadd.f32 0.5, %v514_v24 }
 0x680   :  { %v522_v29 = vmul.f32 %v520_v28, %v515_v25 }
 0x6ec   :  { %v525_v26 = vpop.permute.xlu0 %524 }
 0x6ed   :  { %v527_v27 = vmul.f32 %v525_v26, %v515_v25 }
 0x6ef   :  { %529 = vrot.lane.b32.xlu0 %v527_v27, %s1528_s5  ;;  %v171_v27 = vadd.f32 %v1694_v8, %v1637_v16 }
 0x761   :  { %v530_v30 = vpop.permute.xlu0 %529 }
 0x762   :  { %v532_v31 = vadd.f32 %v530_v30, %v522_v29 }
 0x764   :  { %1444 = vtanh.f32 %v532_v31 }
 0x76e   :  { %v1445_v32 = vpop.eup %1444 }
 0x76f   :  { %535 = vrot.lane.b32.xlu1 %v1445_v32, %s1527_s24 }
 0x773   :  { %545 = vrot.lane.b32.xlu1 %v532_v31, %s1529_s3 }
 0x7e1   :  { %v536_v33 = vpop.permute.xlu1 %535 }
 0x7e2   :  { %v538_v34 = vmul.f32 %v536_v33, %v515_v25 }
 0x7e4   :  { %540 = vrot.lane.b32.xlu0 %v538_v34, %s1528_s5 }
 0x7e5   :  { %v546_v35 = vpop.permute.xlu1 %545 }
 0x7e6   :  { %548 = vst.msk [vmem:[#allocation4] sm:$0xff] %vm33_vm1, %v546_v35 }
 0x7ed   :  { %v637_v36 = vld [vmem:[#allocation4] sm:$0xff] }
 0x7ee   :  { %639 = vrot.lane.b32.xlu1 %v637_v36, %s1528_s5 }
 0x856   :  { %v541_v37 = vpop.permute.xlu0 %540 }
 0x857   :  { %543 = vst.msk [vmem:[#allocation3] sm:$0xff] %vm33_vm1, %v541_v37  ;;  %1203 = vst.msk [vmem:[%s1848_s6 + $0x10] sm:$0xff] %vm33_vm1, %v541_v37 }
 0x85e   :  { %v553_v38 = vld [vmem:[#allocation3] sm:$0xff] }
 0x85f   :  { %1322 = vmatmul.mubr.msk.f32.vlgmr.msra.gmra.mrb[4].mxu1 %vm33_vm1, %v553_v38 }
 0x860   :  { %1404 = vmatpush3.bf16.msra.mxu1 %v1593_v7  ;;  %1343 = vmatprep.mubr.msk.f32.mxu1 %vm1525_vm2, %v1526_v10  ;;  %v640_v50 = vpop.permute.xlu1 %639 }
 0x861   :  { %1405 = vmatprep.subr.bf16.mxu1 %v1524_v3 }
 0x864   :  { %1407 = vmatpush3.bf16.msra.mxu1 %v1612_v13 }
 0x865   :  { %1414 = vmatprep.subr.bf16.mxu1 %v1524_v3 }
 0x932   :  { %v627_v40 = vpop.f32.mrb[4].mxu1 }
 0x933   :  { %v631_v41 = vadd.f32 %v627_v40, %v161_v39  ;;  %v1323_v42 = vpop.f32.mrb[5].mxu1 }
 0x935   :  { %1446 = vtanh.f32 %v631_v41  ;;  %v632_v44 = vmul.f32 0.5, %v631_v41 }
 0x937   :  { %1448 = vtanh.f32 %v632_v44  ;;  %v176_v44 = vadd.f32 %v1637_v16, %v1712_v15 }
 0x93f   :  { %v1447_v43 = vpop.eup %1446 }
 0x940   :  { %644 = vrot.lane.b32.xlu0 %v1447_v43, %s1527_s24 }
 0x941   :  { %v1449_v45 = vpop.eup %1448 }
 0x942   :  { %v634_v46 = vmul.f32 0.5, %v1449_v45 }
 0x944   :  { %v635_v47 = vadd.f32 0.5, %v634_v46 }
 0x946   :  { %v642_v51 = vmul.f32 %v640_v50, %v635_v47 }
 0x9b2   :  { %v645_v48 = vpop.permute.xlu0 %644 }
 0x9b3   :  { %v647_v49 = vmul.f32 %v645_v48, %v635_v47 }
 0x9b5   :  { %649 = vrot.lane.b32.xlu0 %v647_v49, %s1528_s5 }
 0xa27   :  { %v650_v52 = vpop.permute.xlu0 %649 }
 0xa28   :  { %v652_v53 = vadd.f32 %v650_v52, %v642_v51 }
 0xa2a   :  { %1450 = vtanh.f32 %v652_v53 }
 0xa34   :  { %v1451_v54 = vpop.eup %1450 }
 0xa35   :  { %655 = vrot.lane.b32.xlu1 %v1451_v54, %s1527_s24 }
 0xa39   :  { %665 = vrot.lane.b32.xlu1 %v652_v53, %s1529_s3 }
 0xaa7   :  { %v656_v55 = vpop.permute.xlu1 %655 }
 0xaa8   :  { %v658_v56 = vmul.f32 %v656_v55, %v635_v47 }
 0xaaa   :  { %660 = vrot.lane.b32.xlu0 %v658_v56, %s1528_s5 }
 0xaab   :  { %v666_v57 = vpop.permute.xlu1 %665 }
 0xaac   :  { %668 = vst.msk [vmem:[#allocation4] sm:$0xff] %vm33_vm1, %v666_v57 }
 0xab3   :  { %v757_v58 = vld [vmem:[#allocation4] sm:$0xff] }
 0xab4   :  { %759 = vrot.lane.b32.xlu1 %v757_v58, %s1528_s5 }
 0xb1c   :  { %v661_v59 = vpop.permute.xlu0 %660 }
 0xb1d   :  { %663 = vst.msk [vmem:[#allocation3] sm:$0xff] %vm33_vm1, %v661_v59  ;;  %1205 = vst.msk [vmem:[%s1848_s6 + $0x18] sm:$0xff] %vm33_vm1, %v661_v59 }
 0xb24   :  { %v673_v60 = vld [vmem:[#allocation3] sm:$0xff] }
 0xb25   :  { %1333 = vmatmul.mubr.msk.f32.vlgmr.msra.gmra.mrb[10].mxu0 %vm33_vm1, %v673_v60 }
 0xb26   :  { %1410 = vmatpush3.bf16.msra.mxu0 %v1593_v7  ;;  %1354 = vmatprep.mubr.msk.f32.mxu0 %vm1525_vm2, %v1526_v10  ;;  %v760_v17 = vpop.permute.xlu1 %759 }
 0xb27   :  { %1411 = vmatprep.subr.bf16.mxu0 %v1524_v3 }
 0xb2a   :  { %1413 = vmatpush3.bf16.msra.mxu0 %v1612_v13 }
 0xbf8   :  { %v747_v62 = vpop.f32.mrb[10].mxu0 }
 0xbf9   :  { %v751_v63 = vadd.f32 %v747_v62, %v166_v61  ;;  %v1334_v0 = vpop.f32.mrb[11].mxu0 }
 0xbfb   :  { %1452 = vtanh.f32 %v751_v63  ;;  %v752_v2 = vmul.f32 0.5, %v751_v63 }
 0xbfd   :  { %1454 = vtanh.f32 %v752_v2 }
 0xc05   :  { %v1453_v1 = vpop.eup %1452 }
 0xc06   :  { %764 = vrot.lane.b32.xlu0 %v1453_v1, %s1527_s24  ;;  %v181_v1 = vadd.f32 %v1710_v14, %v1637_v16 }
 0xc07   :  { %v1455_v4 = vpop.eup %1454 }
 0xc08   :  { %v754_v5 = vmul.f32 0.5, %v1455_v4 }
 0xc0a   :  { %v755_v6 = vadd.f32 0.5, %v754_v5 }
 0xc0c   :  { %v762_v18 = vmul.f32 %v760_v17, %v755_v6 }
 0xc78   :  { %v765_v11 = vpop.permute.xlu0 %764 }
 0xc79   :  { %v767_v12 = vmul.f32 %v765_v11, %v755_v6 }
 0xc7b   :  { %769 = vrot.lane.b32.xlu0 %v767_v12, %s1528_s5 }
 0xced   :  { %v770_v19 = vpop.permute.xlu0 %769 }
 0xcee   :  { %v772_v9 = vadd.f32 %v770_v19, %v762_v18 }
 0xcf0   :  { %1456 = vtanh.f32 %v772_v9 }
 0xcfa   :  { %v1457_v20 = vpop.eup %1456 }
 0xcfb   :  { %775 = vrot.lane.b32.xlu1 %v1457_v20, %s1527_s24 }
 0xcff   :  { %785 = vrot.lane.b32.xlu1 %v772_v9, %s1529_s3 }
 0xd6d   :  { %v776_v21 = vpop.permute.xlu1 %775 }
 0xd6e   :  { %v778_v22 = vmul.f32 %v776_v21, %v755_v6 }
 0xd70   :  { %780 = vrot.lane.b32.xlu0 %v778_v22, %s1528_s5 }
 0xd71   :  { %v786_v23 = vpop.permute.xlu1 %785 }
 0xd72   :  { %788 = vst.msk [vmem:[#allocation4] sm:$0xff] %vm33_vm1, %v786_v23 }
 0xd79   :  { %v877_v24 = vld [vmem:[#allocation4] sm:$0xff] }
 0xd7a   :  { %879 = vrot.lane.b32.xlu1 %v877_v24, %s1528_s5 }
 0xde2   :  { %v781_v25 = vpop.permute.xlu0 %780 }
 0xde3   :  { %783 = vst.msk [vmem:[#allocation3] sm:$0xff] %vm33_vm1, %v781_v25  ;;  %1207 = vst.msk [vmem:[%s1848_s6 + $0x20] sm:$0xff] %vm33_vm1, %v781_v25 }
 0xdea   :  { %v793_v26 = vld [vmem:[#allocation3] sm:$0xff] }
 0xdeb   :  { %1344 = vmatmul.mubr.msk.f32.vlgmr.msra.gmra.mrb[6].mxu1 %vm33_vm1, %v793_v26 }
 0xdec   :  { %1416 = vmatpush3.bf16.msra.mxu1 %v1593_v7  ;;  %1365 = vmatprep.mubr.msk.f32.mxu1 %vm1525_vm2, %v1526_v10 }
 0xded   :  { %1417 = vmatprep.subr.bf16.mxu1 %v1524_v3  ;;  %v880_v3 = vpop.permute.xlu1 %879 }
 0xdf0   :  { %1419 = vmatpush3.bf16.msra.mxu1 %v1612_v13 }
 0xebe   :  { %v867_v28 = vpop.f32.mrb[6].mxu1 }
 0xebf   :  { %v871_v29 = vadd.f32 %v867_v28, %v171_v27  ;;  %v1345_v30 = vpop.f32.mrb[7].mxu1 }
 0xec1   :  { %1458 = vtanh.f32 %v871_v29  ;;  %v872_v32 = vmul.f32 0.5, %v871_v29 }
 0xec3   :  { %1460 = vtanh.f32 %v872_v32 }
 0xecb   :  { %v1459_v31 = vpop.eup %1458 }
 0xecc   :  { %884 = vrot.lane.b32.xlu0 %v1459_v31, %s1527_s24 }
 0xecd   :  { %v1461_v7 = vpop.eup %1460 }
 0xece   :  { %v874_v33 = vmul.f32 0.5, %v1461_v7 }
 0xed0   :  { %v875_v34 = vadd.f32 0.5, %v874_v33 }
 0xed2   :  { %v882_v13 = vmul.f32 %v880_v3, %v875_v34 }
 0xf3e   :  { %v885_v10 = vpop.permute.xlu0 %884 }
 0xf3f   :  { %v887_v35 = vmul.f32 %v885_v10, %v875_v34 }
 0xf41   :  { %889 = vrot.lane.b32.xlu0 %v887_v35, %s1528_s5 }
 0xfb3   :  { %v890_v36 = vpop.permute.xlu0 %889 }
 0xfb4   :  { %v892_v8 = vadd.f32 %v890_v36, %v882_v13 }
 0xfb6   :  { %1462 = vtanh.f32 %v892_v8 }
 0xfc0   :  { %v1463_v37 = vpop.eup %1462 }
 0xfc1   :  { %895 = vrot.lane.b32.xlu1 %v1463_v37, %s1527_s24 }
 0xfc5   :  { %905 = vrot.lane.b32.xlu1 %v892_v8, %s1529_s3 }
0x1033   :  { %v896_v38 = vpop.permute.xlu1 %895 }
0x1034   :  { %v898_v39 = vmul.f32 %v896_v38, %v875_v34 }
0x1036   :  { %900 = vrot.lane.b32.xlu0 %v898_v39, %s1528_s5 }
0x1037   :  { %v906_v40 = vpop.permute.xlu1 %905 }
0x1038   :  { %908 = vst.msk [vmem:[#allocation4] sm:$0xff] %vm33_vm1, %v906_v40 }
0x103f   :  { %v997_v41 = vld [vmem:[#allocation4] sm:$0xff] }
0x1040   :  { %999 = vrot.lane.b32.xlu1 %v997_v41, %s1528_s5 }
0x10a8   :  { %v901_v42 = vpop.permute.xlu0 %900 }
0x10a9   :  { %903 = vst.msk [vmem:[#allocation3] sm:$0xff] %vm33_vm1, %v901_v42  ;;  %1209 = vst.msk [vmem:[%s1848_s6 + $0x28] sm:$0xff] %vm33_vm1, %v901_v42 }
0x10b0   :  { %v913_v43 = vld [vmem:[#allocation3] sm:$0xff] }
0x10b1   :  { %1355 = vmatmul.mubr.msk.f32.vlgmr.msra.gmra.mrb[12].mxu0 %vm33_vm1, %v913_v43 }
0x10b2   :  { %v1000_v55 = vpop.permute.xlu1 %999 }
0x1184   :  { %v987_v45 = vpop.f32.mrb[12].mxu0 }
0x1185   :  { %v991_v46 = vadd.f32 %v987_v45, %v176_v44  ;;  %v1356_v47 = vpop.f32.mrb[13].mxu0 }
0x1187   :  { %1464 = vtanh.f32 %v991_v46  ;;  %v992_v49 = vmul.f32 0.5, %v991_v46 }
0x1189   :  { %1466 = vtanh.f32 %v992_v49 }
0x1191   :  { %v1465_v48 = vpop.eup %1464 }
0x1192   :  { %1004 = vrot.lane.b32.xlu0 %v1465_v48, %s1527_s24 }
0x1193   :  { %v1467_v50 = vpop.eup %1466 }
0x1194   :  { %v994_v51 = vmul.f32 0.5, %v1467_v50 }
0x1196   :  { %v995_v52 = vadd.f32 0.5, %v994_v51 }
0x1198   :  { %v1002_v56 = vmul.f32 %v1000_v55, %v995_v52 }
0x1204   :  { %v1005_v53 = vpop.permute.xlu0 %1004 }
0x1205   :  { %v1007_v54 = vmul.f32 %v1005_v53, %v995_v52 }
0x1207   :  { %1009 = vrot.lane.b32.xlu0 %v1007_v54, %s1528_s5 }
0x1279   :  { %v1010_v57 = vpop.permute.xlu0 %1009 }
0x127a   :  { %v1012_v15 = vadd.f32 %v1010_v57, %v1002_v56 }
0x127c   :  { %1468 = vtanh.f32 %v1012_v15 }
0x1286   :  { %v1469_v58 = vpop.eup %1468 }
0x1287   :  { %1015 = vrot.lane.b32.xlu1 %v1469_v58, %s1527_s24 }
0x128b   :  { %1025 = vrot.lane.b32.xlu1 %v1012_v15, %s1529_s3 }
0x12f9   :  { %v1016_v59 = vpop.permute.xlu1 %1015 }
0x12fa   :  { %v1018_v60 = vmul.f32 %v1016_v59, %v995_v52 }
0x12fc   :  { %1020 = vrot.lane.b32.xlu0 %v1018_v60, %s1528_s5 }
0x12fd   :  { %v1026_v61 = vpop.permute.xlu1 %1025 }
0x12fe   :  { %1028 = vst.msk [vmem:[#allocation4] sm:$0xff] %vm33_vm1, %v1026_v61 }
0x1305   :  { %v1117_v62 = vld [vmem:[#allocation4] sm:$0xff] }
0x1306   :  { %1119 = vrot.lane.b32.xlu1 %v1117_v62, %s1528_s5 }
0x136e   :  { %v1021_v63 = vpop.permute.xlu0 %1020 }
0x136f   :  { %1023 = vst.msk [vmem:[#allocation3] sm:$0xff] %vm33_vm1, %v1021_v63  ;;  %1211 = vst.msk [vmem:[%s1848_s6 + $0x30] sm:$0xff] %vm33_vm1, %v1021_v63 }
0x1376   :  { %v1033_v0 = vld [vmem:[#allocation3] sm:$0xff] }
0x1377   :  { %1366 = vmatmul.mubr.msk.f32.vlgmr.msra.gmra.mrb[8].mxu1 %vm33_vm1, %v1033_v0 }
0x1378   :  { %v1120_v20 = vpop.permute.xlu1 %1119 }
0x144a   :  { %v1107_v2 = vpop.f32.mrb[8].mxu1 }
0x144b   :  { %v1111_v4 = vadd.f32 %v1107_v2, %v181_v1  ;;  %v1367_v5 = vpop.f32.mrb[9].mxu1 }
0x144d   :  { %1470 = vtanh.f32 %v1111_v4  ;;  %v1112_v11 = vmul.f32 0.5, %v1111_v4 }
0x144f   :  { %1472 = vtanh.f32 %v1112_v11 }
0x1457   :  { %v1471_v6 = vpop.eup %1470 }
0x1458   :  { %1124 = vrot.lane.b32.xlu0 %v1471_v6, %s1527_s24 }
0x1459   :  { %v1473_v12 = vpop.eup %1472 }
0x145a   :  { %v1114_v17 = vmul.f32 0.5, %v1473_v12 }
0x145c   :  { %v1115_v18 = vadd.f32 0.5, %v1114_v17 }
0x145e   :  { %v1122_v21 = vmul.f32 %v1120_v20, %v1115_v18 }
0x14ca   :  { %v1125_v19 = vpop.permute.xlu0 %1124 }
0x14cb   :  { %v1127_v9 = vmul.f32 %v1125_v19, %v1115_v18 }
0x14cd   :  { %1129 = vrot.lane.b32.xlu0 %v1127_v9, %s1528_s5 }
0x153f   :  { %v1130_v22 = vpop.permute.xlu0 %1129 }
0x1540   :  { %v1132_v16 = vadd.f32 %v1130_v22, %v1122_v21 }
0x1542   :  { %1474 = vtanh.f32 %v1132_v16 }
0x154c   :  { %v1475_v14 = vpop.eup %1474 }
0x154d   :  { %1135 = vrot.lane.b32.xlu1 %v1475_v14, %s1527_s24 }
0x1551   :  { %1145 = vrot.lane.b32.xlu1 %v1132_v16, %s1529_s3 }
0x15bf   :  { %v1136_v23 = vpop.permute.xlu1 %1135 }
0x15c0   :  { %v1138_v24 = vmul.f32 %v1136_v23, %v1115_v18 }
0x15c2   :  { %1140 = vrot.lane.b32.xlu0 %v1138_v24, %s1528_s5 }
0x15c3   :  { %v1146_v25 = vpop.permute.xlu1 %1145 }
0x15c4   :  { %1148 = vst.msk [vmem:[#allocation4] sm:$0xff] %vm33_vm1, %v1146_v25 }
0x15cb   :  { %v1156_v26 = vld [vmem:[#allocation4] sm:$0xff] }
0x15cc   :  { %1157 = vst.msk [vmem:[#allocation7] sm:$0xff] %vm33_vm1, %v1156_v26 }
0x15cd   :  { %1487 = shalt.err (!%p1484_p4)
}
0x15ce   :  { %s1488_s5 = scalar_lea.hbm %s1850_s8, 128 }
0x15cf   :  { %p1489_p5 = scmp.ne.s32.totalorder %s1850_s8, %s1488_s5  ;;  %p1492_p6 = scmp.lt.u32.totalorder %s1488_s5, %s1850_s8 }
0x15d1   :  { %p1494_p7 = pnand %p1492_p6, %p1489_p5 }
0x15d3   :  { %1497 = shalt.err (!%p1494_p7)
}
0x15d4   :  { %1179 = dma.vmem_to_hbm [thread:$0]  %s1177_s27, 128, %s1850_s8, [#allocation8]  }
0x15d5   :  { %s1531_s1 = smov [#allocation5]  }
0x15d6   :  { %s1166_s15 = sshll.u32 %s1531_s1, 4  ;;  %s1167_s15 = int_to_ptr.vmem [resolvable:$true] %s1166_s15 }
0x15d7   :  { %s1498_s0 = scalar_lea.vmem %s1167_s15, 128  ;;  %p1503_p9 = scmp.lt.s32.totalorder %s1167_s15, %s1167_s15 }
0x15d8   :  { %p1499_p8 = scmp.ne.s32.totalorder %s1167_s15, %s1498_s0  ;;  %p1504_p10 = scmp.lt.s32.totalorder %s1498_s0, %s1498_s0 }
0x15da   :  { %p1505_p11 = por %p1504_p10, %p1503_p9 }
0x15dc   :  { %p1506_p12 = pnand %p1505_p11, %p1499_p8 }
0x1634   :  { %v1141_v27 = vpop.permute.xlu0 %1140 }
0x1635   :  { %1143 = vst.msk [vmem:[#allocation3] sm:$0xff] %vm33_vm1, %v1141_v27  ;;  %1213 = vst.msk [vmem:[%s1848_s6 + $0x38] sm:$0xff] %vm33_vm1, %v1141_v27 }
0x163c   :  { %v1154_v28 = vld [vmem:[#allocation3] sm:$0xff] }
0x163d   :  { %1155 = vst.msk [vmem:[#allocation5] sm:$0xff] %vm33_vm1, %v1154_v28 }
0x163e   :  { %1509 = shalt.err (!%p1506_p12)
}
0x163f   :  { %s1510_s17 = scalar_lea.hbm %s1849_s7, 128 }
0x1640   :  { %p1511_p13 = scmp.ne.s32.totalorder %s1849_s7, %s1510_s17  ;;  %p1514_p0 = scmp.lt.u32.totalorder %s1510_s17, %s1849_s7 }
0x1642   :  { %p1516_p1 = pnand %p1514_p0, %p1511_p13 }
0x1644   :  { %1519 = shalt.err (!%p1516_p1)
}
0x1645   :  { %1169 = dma.vmem_to_hbm [thread:$0]  %s1167_s15, 128, %s1849_s7, [#allocation6]  }
0x1646   :  { %1520 = dma.done.wait [#allocation6], 128  }
0x1647   :  { %1521 = vsyncadd [#allocation6], 4294967168 }
0x1648   :  { %1522 = dma.done.wait [#allocation8], 128  }
0x1649   :  { %1523 = vsyncadd [#allocation8], 4294967168 }
0x164a   :  { %1188 = vsyncpa [#allocation6], 1 }
0x164b   :  { %1189 = vsyncpa [#allocation8], 1 }

</bundles_post_ra>
